<compile_context>
chip_gen: v6e
topology: v6e:2x2x1
jax: 0.10.0
libtpu: 0.0.40
codegen_flags: <defaults>
</compile_context>

<pallas_src>
import jax
import jax.numpy as jnp
import numpy as np
from jax import lax
from jax.experimental import pallas as pl
from jax.experimental.pallas import tpu as pltpu

EPS = 1e-5                 # BatchNorm2d default eps
_MIN_PALLAS_ROWS = 8       # below one sublane tile: kernel launch > useful work
_ROW_TILE = 512            # rows per grid step; ~1.3 MiB/step double-buffered


def convwidth(w, p, k, s):
    """Same as the PyTorch source's ConvWidth."""
    return 1 + (w + 2 * p - (k - 1) - 1) // s


def _round_up(x, m):
    return ((x + m - 1) // m) * m


# ----------------------------------------------------------------------------
# Pallas kernels
# ----------------------------------------------------------------------------
def _matmul_kernel(x_ref, w_ref, o_ref):
    # Plain channel contraction (layer 1: no preceding BatchNorm).
    o_ref[...] = jnp.dot(x_ref[...].astype(jnp.bfloat16), w_ref[...],
                         preferred_element_type=jnp.float32)


def _bn_relu_matmul_kernel(x_ref, scale_ref, shift_ref, w_ref, o_ref):
    # Previous layer's BatchNorm affine (global stats folded into scale/shift)
    # + ReLU fused into this layer's channel contraction.
    x = jnp.maximum(x_ref[...] * scale_ref[...] + shift_ref[...], 0.0)
    o_ref[...] = jnp.dot(x.astype(jnp.bfloat16), w_ref[...],
                         preferred_element_type=jnp.float32)


def _bn_stats_kernel(x_ref, s_ref, ss_ref):
    # Global per-channel sum / sum-of-squares, accumulated across the
    # "arbitrary" row-tile axis (NOT per-tile mean/var).
    @pl.when(pl.program_id(0) == 0)
    def _():
        s_ref[...] = jnp.zeros_like(s_ref)
        ss_ref[...] = jnp.zeros_like(ss_ref)

    x = x_ref[...]
    s_ref[...] += jnp.sum(x, axis=0, keepdims=True)
    ss_ref[...] += jnp.sum(x * x, axis=0, keepdims=True)


def _sigmoid_kernel(x_ref, o_ref):
    # sigmoid = 1 / (1 + exp(-x)): exp on the EUP, reciprocal via approximate
    # EUP vrcp instead of a VALU divide.
    o_ref[...] = pl.reciprocal(1.0 + jnp.exp(-x_ref[...]), approx=True)


# ----------------------------------------------------------------------------
# Pallas-call wrappers (row-tiled grids)
# ----------------------------------------------------------------------------
def _convt_matmul(xf, Wm, scale, shift):
    """(R, Cin) f32 @ (Cin, Cout*k*k) bf16 -> (R, Cout*k*k) f32.

    If scale/shift are given, the previous layer's BatchNorm affine + ReLU is
    applied to x inside the kernel before the contraction."""
    R, Cin = xf.shape
    Ncols = Wm.shape[1]

    if R < _MIN_PALLAS_ROWS:
        # Tiny matmul (e.g. 1x1 latent with small batch): launch overhead
        # dominates -> inline, fused by the surrounding jit (review item).
        xa = xf if scale is None else jnp.maximum(xf * scale + shift, 0.0)
        return jnp.dot(xa.astype(jnp.bfloat16), Wm,
                       preferred_element_type=jnp.float32)

    tr = min(_ROW_TILE, _round_up(R, 8))
    Rp = _round_up(R, tr)
    xp = jnp.pad(xf, ((0, Rp - R), (0, 0)))       # padded rows sliced off below
    grid = (Rp // tr,)
    x_spec = pl.BlockSpec((tr, Cin), lambda i: (i, 0))
    w_spec = pl.BlockSpec((Cin, Ncols), lambda i: (0, 0))
    o_spec = pl.BlockSpec((tr, Ncols), lambda i: (i, 0))
    params = pltpu.CompilerParams(dimension_semantics=("parallel",))

    if scale is None:
        out = pl.pallas_call(
            _matmul_kernel,
            out_shape=jax.ShapeDtypeStruct((Rp, Ncols), jnp.float32),
            grid=grid, in_specs=[x_spec, w_spec], out_specs=o_spec,
            compiler_params=params,
        )(xp, Wm)
    else:
        v_spec = pl.BlockSpec((1, Cin), lambda i: (0, 0))
        out = pl.pallas_call(
            _bn_relu_matmul_kernel,
            out_shape=jax.ShapeDtypeStruct((Rp, Ncols), jnp.float32),
            grid=grid, in_specs=[x_spec, v_spec, v_spec, w_spec],
            out_specs=o_spec, compiler_params=params,
        )(xp, scale, shift, Wm)
    return out[:R]


def _bn_stats(yf):
    """Per-channel (sum, sumsq) over ALL rows of yf: (R, C) -> ((C,), (C,))."""
    R, C = yf.shape
    tr = min(_ROW_TILE, _round_up(R, 8))
    Rp = _round_up(R, tr)
    yp = jnp.pad(yf, ((0, Rp - R), (0, 0)))       # zero rows don't change sums
    s, ss = pl.pallas_call(
        _bn_stats_kernel,
        out_shape=(jax.ShapeDtypeStruct((1, C), jnp.float32),
                   jax.ShapeDtypeStruct((1, C), jnp.float32)),
        grid=(Rp // tr,),
        in_specs=[pl.BlockSpec((tr, C), lambda i: (i, 0))],
        out_specs=(pl.BlockSpec((1, C), lambda i: (0, 0)),
                   pl.BlockSpec((1, C), lambda i: (0, 0))),
        compiler_params=pltpu.CompilerParams(
            dimension_semantics=("arbitrary",)),
    )(yp)
    return s[0], ss[0]


def _pallas_sigmoid(y):
    """Elementwise sigmoid on a lane-dense (rows, 128) view of y."""
    shape = y.shape
    T = y.size
    LANE = 128
    rows = _round_up(pl.cdiv(T, LANE), 8)
    tr = min(_ROW_TILE, rows)
    rows = _round_up(rows, tr)
    flat = jnp.pad(y.reshape(-1), (0, rows * LANE - T)).reshape(rows, LANE)
    out = pl.pallas_call(
        _sigmoid_kernel,
        out_shape=jax.ShapeDtypeStruct((rows, LANE), jnp.float32),
        grid=(rows // tr,),
        in_specs=[pl.BlockSpec((tr, LANE), lambda i: (i, 0))],
        out_specs=pl.BlockSpec((tr, LANE), lambda i: (i, 0)),
        compiler_params=pltpu.CompilerParams(
            dimension_semantics=("parallel",)),
    )(flat)
    return out.reshape(-1)[:T].reshape(shape)


# ----------------------------------------------------------------------------
# JAX glue: col2im overlap-add (pure pads + adds, no scatter, NHWC)
# ----------------------------------------------------------------------------
def _col2im(cols, N, H, W, Cout, k, s, p):
    """cols: (N*H*W, Cout*k*k) -> transposed-conv output (N, Ho, Wo, Cout)."""
    Hf, Wf = (H - 1) * s + k, (W - 1) * s + k
    cols6 = cols.reshape(N, H, W, Cout, k, k)
    zero = jnp.array(0.0, cols.dtype)
    out = jnp.zeros((N, Hf, Wf, Cout), cols.dtype)
    for kh in range(k):
        for kw in range(k):
            out = out + lax.pad(
                cols6[:, :, :, :, kh, kw], zero,
                ((0, 0, 0),
                 (kh, k - 1 - kh, s - 1),       # place at kh, dilate by stride
                 (kw, k - 1 - kw, s - 1),
                 (0, 0, 0)))
    return out[:, p:Hf - p, p:Wf - p, :]


# ----------------------------------------------------------------------------
# Generator
# ----------------------------------------------------------------------------
class PallasGenerator:
    """Mirrors torch `Generator.__init__` / `forward` semantics."""

    def __init__(self, data, param, key):
        ks = [param[f'kernal_{i}'] for i in range(1, 6)]
        ps = [param[f'padding_{i}'] for i in range(1, 6)]
        ss = [param[f'stride_{i}'] for i in range(1, 6)]
        w4 = convwidth(data.res, ps[4], ks[4], ss[4])
        w3 = convwidth(w4, ps[3], ks[3], ss[3])
        w2 = convwidth(w3, ps[2], ks[2], ss[2])
        w1 = convwidth(w2, ps[1], ks[1], ss[1])
        self.n_lat = convwidth(w1, ps[0], ks[0], ss[0])

        chans = [self.n_lat, param['Conv1'], param['Conv2'],
                 param['Conv3'], param['Conv4'], data.channels]
        self.layers = []
        for i in range(5):
            key, kw_, kg, kb = jax.random.split(key, 4)
            cin, cout, k = chans[i], chans[i + 1], ks[i]
            W = 0.05 * jax.random.normal(kw_, (cin, cout, k, k), jnp.float32)
            # Weight prepared ONCE: (Cin, Cout*k*k), bf16 for the MXU path.
            Wm = W.reshape(cin, cout * k * k).astype(jnp.bfloat16)
            # Reference uses the same (bf16-rounded) weights, in f32.
            Wref = Wm.astype(jnp.float32).reshape(cin, cout, k, k)
            if i < 4:  # BatchNorm2d affine params (deterministic, non-trivial)
                g = 1.0 + 0.1 * jax.random.normal(kg, (cout,), jnp.float32)
                b = 0.1 * jax.random.normal(kb, (cout,), jnp.float32)
            else:
                g = b = None
            self.layers.append((Wm, Wref, g, b, k, ss[i], ps[i], cin, cout))

        self._forward = jax.jit(self._forward_impl)
        self._reference = jax.jit(self._reference_impl)

    # -------- Pallas forward (hot path in kernels, NHWC internally) --------
    def __call__(self, x):
        return self._forward(x)

    def _forward_impl(self, x_nchw):
        x = jnp.transpose(x_nchw, (0, 2, 3, 1))           # NHWC between layers
        scale = shift = None                               # folded BN of prev layer
        for i, (Wm, _, g, b, k, s, p, cin, cout) in enumerate(self.layers):
            N, H, Wsp, _ = x.shape
            cols = _convt_matmul(x.reshape(N * H * Wsp, cin), Wm, scale, shift)
            y = _col2im(cols, N, H, Wsp, cout, k, s, p)    # (N, Ho, Wo, Cout)
            if i < 4:
                Ho, Wo = y.shape[1], y.shape[2]
                cnt = float(N * Ho * Wo)
                sm, sq = _bn_stats(y.reshape(N * Ho * Wo, cout))
                mean = sm / cnt
                var = sq / cnt - mean * mean               # biased (training) var
                inv = lax.rsqrt(var + EPS)
                scale = (g * inv).reshape(1, cout)
                shift = (b - g * mean * inv).reshape(1, cout)
                x = y         # keep raw; BN affine + ReLU fused into next matmul
            else:
                x = _pallas_sigmoid(y)
        return jnp.transpose(x, (0, 3, 1, 2))              # NCHW at the boundary

    # -------- pure-JAX reference (for verification) --------
    def reference(self, x):
        return self._reference(x)

    def _reference_impl(self, x):
        for (_, Wref, g, b, k, s, p, cin, cout) in self.layers:
            Wc = jnp.transpose(Wref[:, :, ::-1, ::-1], (1, 0, 2, 3))  # OIHW
            y = lax.conv_general_dilated(
                x, Wc, (1, 1), [(k - 1 - p, k - 1 - p)] * 2,
                lhs_dilation=(s, s),
                dimension_numbers=('NCHW', 'OIHW', 'NCHW'),
                precision=lax.Precision.HIGHEST)
            if g is not None:
                m = y.mean((0, 2, 3), keepdims=True)
                v = ((y - m) ** 2).mean((0, 2, 3), keepdims=True)
                y = (y - m) * lax.rsqrt(v + EPS)
                y = y * g.reshape(1, -1, 1, 1) + b.reshape(1, -1, 1, 1)
                y = jnp.maximum(y, 0.0)
            else:
                y = jax.nn.sigmoid(y)
            x = y
        return x


if __name__ == "__main__":
    class _Data:
        pass

    data = _Data()
    data.res = 32
    data.channels = 3
    param = dict(kernal_1=1, padding_1=0, stride_1=1,
                 kernal_2=3, padding_2=1, stride_2=1,
                 kernal_3=4, padding_3=1, stride_3=2,
                 kernal_4=4, padding_4=1, stride_4=2,
                 kernal_5=4, padding_5=1, stride_5=2,
                 Conv1=32, Conv2=16, Conv3=16, Conv4=8)

    key = jax.random.PRNGKey(0)
    key, wkey, xkey = jax.random.split(key, 3)
    gen = PallasGenerator(data, param, wkey)

    # latent vector: (batch, n_lat, 1, 1) like the DCGAN generator input
    x = jax.random.normal(xkey, (8, gen.n_lat, 1, 1), jnp.float32)

    out = jax.block_until_ready(gen(x))
    ref = jax.block_until_ready(gen.reference(x))

    # bf16 matmul operands (f32 accumulation) + approx reciprocal in sigmoid.
    np.testing.assert_allclose(np.asarray(out), np.asarray(ref),
                               rtol=1e-2, atol=1e-2)
    print("KERNEL_OK")
</pallas_src>

<mosaic_0001>
module attributes {stable_mosaic.version = 11 : i64} {
  func.func @_matmul_kernel(%arg0: i32, %arg1: memref<8x4xf32, #tpu.memory_space<vmem>>, %arg2: memref<4x32xbf16, #tpu.memory_space<vmem>>, %arg3: memref<8x32xf32, #tpu.memory_space<vmem>>) attributes {dimension_semantics = [#tpu.dimension_semantics<parallel>], iteration_bounds = array<i64: 1>, scalar_prefetch = 0 : i64, scratch_operands = 0 : i64, tpu.core_type = #tpu.core_type<tc>, window_params = [{transform_indices = @transform_0, window_bounds = array<i64: 8, 4>}, {pipeline_mode = #tpu.pipeline_mode<synchronous>, transform_indices = @transform_1, window_bounds = array<i64: 4, 32>}, {transform_indices = @transform_2, window_bounds = array<i64: 8, 32>}]} {
    %c0 = arith.constant 0 : index
    %c0_0 = arith.constant 0 : index
    %0 = vector.load %arg1[%c0, %c0_0] : memref<8x4xf32, #tpu.memory_space<vmem>>, vector<8x4xf32>
    %1 = arith.truncf %0 : vector<8x4xf32> to vector<8x4xbf16>
    %c0_1 = arith.constant 0 : index
    %c0_2 = arith.constant 0 : index
    %2 = vector.load %arg2[%c0_1, %c0_2] : memref<4x32xbf16, #tpu.memory_space<vmem>>, vector<4x32xbf16>
    %cst = arith.constant dense<0.000000e+00> : vector<8x32xf32>
    %3 = tpu.matmul %1, %2, %cst {dimension_numbers = #tpu.dot_dimension_numbers<[1], [0], [0], [1], [0, 0, 1, 1], [], []>} : vector<8x4xbf16>, vector<4x32xbf16>, vector<8x32xf32> -> vector<8x32xf32>
    %c0_3 = arith.constant 0 : index
    %c0_4 = arith.constant 0 : index
    %4 = vector.load %arg3[%c0_3, %c0_4] : memref<8x32xf32, #tpu.memory_space<vmem>>, vector<8x32xf32>
    tpu.vector_store %arg3[%c0_3, %c0_4], %3 {strides = array<i32>} : memref<8x32xf32, #tpu.memory_space<vmem>>, vector<8x32xf32>,
    return
  }
  func.func @transform_0(%arg0: i32) -> (i32, i32) {
    %c0_i32 = arith.constant 0 : i32
    %c0_i32_0 = arith.constant 0 : i32
    return %arg0, %c0_i32 : i32, i32
  }
  func.func @transform_1(%arg0: i32) -> (i32, i32) {
    %c0_i32 = arith.constant 0 : i32
    %c0_i32_0 = arith.constant 0 : i32
    %c0_i32_1 = arith.constant 0 : i32
    return %c0_i32, %c0_i32_0 : i32, i32
  }
  func.func @transform_2(%arg0: i32) -> (i32, i32) {
    %c0_i32 = arith.constant 0 : i32
    %c0_i32_0 = arith.constant 0 : i32
    return %arg0, %c0_i32 : i32, i32
  }
}

module attributes {stable_mosaic.version = 11 : i64} {
  func.func @_bn_stats_kernel(%arg0: i32, %arg1: memref<8x32xf32, #tpu.memory_space<vmem>>, %arg2: memref<1x32xf32, #tpu.memory_space<vmem>>, %arg3: memref<1x32xf32, #tpu.memory_space<vmem>>) attributes {dimension_semantics = [#tpu.dimension_semantics<arbitrary>], iteration_bounds = array<i64: 1>, scalar_prefetch = 0 : i64, scratch_operands = 0 : i64, tpu.core_type = #tpu.core_type<tc>, window_params = [{transform_indices = @transform_0, window_bounds = array<i64: 8, 32>}, {pipeline_mode = #tpu.pipeline_mode<synchronous>, transform_indices = @transform_1, window_bounds = array<i64: 1, 32>}, {pipeline_mode = #tpu.pipeline_mode<synchronous>, transform_indices = @transform_2, window_bounds = array<i64: 1, 32>}]} {
    %c0_i32 = arith.constant 0 : i32
    %0 = arith.cmpi eq, %arg0, %c0_i32 : i32
    %1 = arith.extui %0 : i1 to i32
    %c0_i32_0 = arith.constant 0 : i32
    %2 = arith.cmpi ne, %1, %c0_i32_0 : i32
    scf.if %2 {
      %cst_11 = arith.constant 0.000000e+00 : f32
      %15 = vector.broadcast %cst_11 : f32 to vector<1x32xf32>
      %c0_12 = arith.constant 0 : index
      %c0_13 = arith.constant 0 : index
      %16 = vector.load %arg2[%c0_12, %c0_13] : memref<1x32xf32, #tpu.memory_space<vmem>>, vector<1x32xf32>
      tpu.vector_store %arg2[%c0_12, %c0_13], %15 {strides = array<i32>} : memref<1x32xf32, #tpu.memory_space<vmem>>, vector<1x32xf32>,
      %cst_14 = arith.constant 0.000000e+00 : f32
      %17 = vector.broadcast %cst_14 : f32 to vector<1x32xf32>
      %c0_15 = arith.constant 0 : index
      %c0_16 = arith.constant 0 : index
      %18 = vector.load %arg3[%c0_15, %c0_16] : memref<1x32xf32, #tpu.memory_space<vmem>>, vector<1x32xf32>
      tpu.vector_store %arg3[%c0_15, %c0_16], %17 {strides = array<i32>} : memref<1x32xf32, #tpu.memory_space<vmem>>, vector<1x32xf32>,
    } else {
    }
    %c0 = arith.constant 0 : index
    %c0_1 = arith.constant 0 : index
    %3 = vector.load %arg1[%c0, %c0_1] : memref<8x32xf32, #tpu.memory_space<vmem>>, vector<8x32xf32>
    %c0_2 = arith.constant 0 : index
    %c0_3 = arith.constant 0 : index
    %4 = vector.load %arg2[%c0_2, %c0_3] : memref<1x32xf32, #tpu.memory_space<vmem>>, vector<1x32xf32>
    %cst = arith.constant dense<0.000000e+00> : vector<32xf32>
    %5 = vector.multi_reduction <add>, %3, %cst [0] : vector<8x32xf32> to vector<32xf32>
    %6 = vector.shape_cast %5 : vector<32xf32> to vector<1x32xf32>
    %7 = arith.addf %4, %6 : vector<1x32xf32>
    %c0_4 = arith.constant 0 : index
    %c0_5 = arith.constant 0 : index
    %8 = vector.load %arg2[%c0_4, %c0_5] : memref<1x32xf32, #tpu.memory_space<vmem>>, vector<1x32xf32>
    tpu.vector_store %arg2[%c0_4, %c0_5], %7 {strides = array<i32>} : memref<1x32xf32, #tpu.memory_space<vmem>>, vector<1x32xf32>,
    %c0_6 = arith.constant 0 : index
    %c0_7 = arith.constant 0 : index
    %9 = vector.load %arg3[%c0_6, %c0_7] : memref<1x32xf32, #tpu.memory_space<vmem>>, vector<1x32xf32>
    %10 = arith.mulf %3, %3 : vector<8x32xf32>
    %cst_8 = arith.constant dense<0.000000e+00> : vector<32xf32>
    %11 = vector.multi_reduction <add>, %10, %cst_8 [0] : vector<8x32xf32> to vector<32xf32>
    %12 = vector.shape_cast %11 : vector<32xf32> to vector<1x32xf32>
    %13 = arith.addf %9, %12 : vector<1x32xf32>
    %c0_9 = arith.constant 0 : index
    %c0_10 = arith.constant 0 : index
    %14 = vector.load %arg3[%c0_9, %c0_10] : memref<1x32xf32, #tpu.memory_space<vmem>>, vector<1x32xf32>
    tpu.vector_store %arg3[%c0_9, %c0_10], %13 {strides = array<i32>} : memref<1x32xf32, #tpu.memory_space<vmem>>, vector<1x32xf32>,
    return
  }
  func.func @transform_0(%arg0: i32) -> (i32, i32) {
    %c0_i32 = arith.constant 0 : i32
    %c0_i32_0 = arith.constant 0 : i32
    return %arg0, %c0_i32 : i32, i32
  }
  func.func @transform_1(%arg0: i32) -> (i32, i32) {
    %c0_i32 = arith.constant 0 : i32
    %c0_i32_0 = arith.constant 0 : i32
    %c0_i32_1 = arith.constant 0 : i32
    return %c0_i32, %c0_i32_0 : i32, i32
  }
  func.func @transform_2(%arg0: i32) -> (i32, i32) {
    %c0_i32 = arith.constant 0 : i32
    %c0_i32_0 = arith.constant 0 : i32
    %c0_i32_1 = arith.constant 0 : i32
    return %c0_i32, %c0_i32_0 : i32, i32
  }
}

module attributes {stable_mosaic.version = 11 : i64} {
  func.func @_bn_relu_matmul_kernel(%arg0: i32, %arg1: memref<8x32xf32, #tpu.memory_space<vmem>>, %arg2: memref<1x32xf32, #tpu.memory_space<vmem>>, %arg3: memref<1x32xf32, #tpu.memory_space<vmem>>, %arg4: memref<32x144xbf16, #tpu.memory_space<vmem>>, %arg5: memref<8x144xf32, #tpu.memory_space<vmem>>) attributes {dimension_semantics = [#tpu.dimension_semantics<parallel>], iteration_bounds = array<i64: 1>, scalar_prefetch = 0 : i64, scratch_operands = 0 : i64, tpu.core_type = #tpu.core_type<tc>, window_params = [{transform_indices = @transform_0, window_bounds = array<i64: 8, 32>}, {pipeline_mode = #tpu.pipeline_mode<synchronous>, transform_indices = @transform_1, window_bounds = array<i64: 1, 32>}, {pipeline_mode = #tpu.pipeline_mode<synchronous>, transform_indices = @transform_2, window_bounds = array<i64: 1, 32>}, {pipeline_mode = #tpu.pipeline_mode<synchronous>, transform_indices = @transform_3, window_bounds = array<i64: 32, 144>}, {transform_indices = @transform_4, window_bounds = array<i64: 8, 144>}]} {
    %c0 = arith.constant 0 : index
    %c0_0 = arith.constant 0 : index
    %0 = vector.load %arg1[%c0, %c0_0] : memref<8x32xf32, #tpu.memory_space<vmem>>, vector<8x32xf32>
    %c0_1 = arith.constant 0 : index
    %c0_2 = arith.constant 0 : index
    %1 = vector.load %arg2[%c0_1, %c0_2] : memref<1x32xf32, #tpu.memory_space<vmem>>, vector<1x32xf32>
    %2 = vector.broadcast %1 : vector<1x32xf32> to vector<8x32xf32>
    %3 = arith.mulf %0, %2 : vector<8x32xf32>
    %c0_3 = arith.constant 0 : index
    %c0_4 = arith.constant 0 : index
    %4 = vector.load %arg3[%c0_3, %c0_4] : memref<1x32xf32, #tpu.memory_space<vmem>>, vector<1x32xf32>
    %5 = vector.broadcast %4 : vector<1x32xf32> to vector<8x32xf32>
    %6 = arith.addf %3, %5 : vector<8x32xf32>
    %cst = arith.constant 0.000000e+00 : f32
    %7 = vector.broadcast %cst : f32 to vector<8x32xf32>
    %8 = arith.maximumf %6, %7 : vector<8x32xf32>
    %9 = arith.truncf %8 : vector<8x32xf32> to vector<8x32xbf16>
    %c0_5 = arith.constant 0 : index
    %c0_6 = arith.constant 0 : index
    %10 = vector.load %arg4[%c0_5, %c0_6] : memref<32x144xbf16, #tpu.memory_space<vmem>>, vector<32x144xbf16>
    %cst_7 = arith.constant dense<0.000000e+00> : vector<8x144xf32>
    %11 = tpu.matmul %9, %10, %cst_7 {dimension_numbers = #tpu.dot_dimension_numbers<[1], [0], [0], [1], [0, 0, 1, 1], [], []>} : vector<8x32xbf16>, vector<32x144xbf16>, vector<8x144xf32> -> vector<8x144xf32>
    %c0_8 = arith.constant 0 : index
    %c0_9 = arith.constant 0 : index
    %12 = vector.load %arg5[%c0_8, %c0_9] : memref<8x144xf32, #tpu.memory_space<vmem>>, vector<8x144xf32>
    tpu.vector_store %arg5[%c0_8, %c0_9], %11 {strides = array<i32>} : memref<8x144xf32, #tpu.memory_space<vmem>>, vector<8x144xf32>,
    return
  }
  func.func @transform_0(%arg0: i32) -> (i32, i32) {
    %c0_i32 = arith.constant 0 : i32
    %c0_i32_0 = arith.constant 0 : i32
    return %arg0, %c0_i32 : i32, i32
  }
  func.func @transform_1(%arg0: i32) -> (i32, i32) {
    %c0_i32 = arith.constant 0 : i32
    %c0_i32_0 = arith.constant 0 : i32
    %c0_i32_1 = arith.constant 0 : i32
    return %c0_i32, %c0_i32_0 : i32, i32
  }
  func.func @transform_2(%arg0: i32) -> (i32, i32) {
    %c0_i32 = arith.constant 0 : i32
    %c0_i32_0 = arith.constant 0 : i32
    %c0_i32_1 = arith.constant 0 : i32
    return %c0_i32, %c0_i32_0 : i32, i32
  }
  func.func @transform_3(%arg0: i32) -> (i32, i32) {
    %c0_i32 = arith.constant 0 : i32
    %c0_i32_0 = arith.constant 0 : i32
    %c0_i32_1 = arith.constant 0 : i32
    return %c0_i32, %c0_i32_0 : i32, i32
  }
  func.func @transform_4(%arg0: i32) -> (i32, i32) {
    %c0_i32 = arith.constant 0 : i32
    %c0_i32_0 = arith.constant 0 : i32
    return %arg0, %c0_i32 : i32, i32
  }
}

module attributes {stable_mosaic.version = 11 : i64} {
  func.func @_bn_stats_kernel(%arg0: i32, %arg1: memref<8x16xf32, #tpu.memory_space<vmem>>, %arg2: memref<1x16xf32, #tpu.memory_space<vmem>>, %arg3: memref<1x16xf32, #tpu.memory_space<vmem>>) attributes {dimension_semantics = [#tpu.dimension_semantics<arbitrary>], iteration_bounds = array<i64: 1>, scalar_prefetch = 0 : i64, scratch_operands = 0 : i64, tpu.core_type = #tpu.core_type<tc>, window_params = [{transform_indices = @transform_0, window_bounds = array<i64: 8, 16>}, {pipeline_mode = #tpu.pipeline_mode<synchronous>, transform_indices = @transform_1, window_bounds = array<i64: 1, 16>}, {pipeline_mode = #tpu.pipeline_mode<synchronous>, transform_indices = @transform_2, window_bounds = array<i64: 1, 16>}]} {
    %c0_i32 = arith.constant 0 : i32
    %0 = arith.cmpi eq, %arg0, %c0_i32 : i32
    %1 = arith.extui %0 : i1 to i32
    %c0_i32_0 = arith.constant 0 : i32
    %2 = arith.cmpi ne, %1, %c0_i32_0 : i32
    scf.if %2 {
      %cst_11 = arith.constant 0.000000e+00 : f32
      %15 = vector.broadcast %cst_11 : f32 to vector<1x16xf32>
      %c0_12 = arith.constant 0 : index
      %c0_13 = arith.constant 0 : index
      %16 = vector.load %arg2[%c0_12, %c0_13] : memref<1x16xf32, #tpu.memory_space<vmem>>, vector<1x16xf32>
      tpu.vector_store %arg2[%c0_12, %c0_13], %15 {strides = array<i32>} : memref<1x16xf32, #tpu.memory_space<vmem>>, vector<1x16xf32>,
      %cst_14 = arith.constant 0.000000e+00 : f32
      %17 = vector.broadcast %cst_14 : f32 to vector<1x16xf32>
      %c0_15 = arith.constant 0 : index
      %c0_16 = arith.constant 0 : index
      %18 = vector.load %arg3[%c0_15, %c0_16] : memref<1x16xf32, #tpu.memory_space<vmem>>, vector<1x16xf32>
      tpu.vector_store %arg3[%c0_15, %c0_16], %17 {strides = array<i32>} : memref<1x16xf32, #tpu.memory_space<vmem>>, vector<1x16xf32>,
    } else {
    }
    %c0 = arith.constant 0 : index
    %c0_1 = arith.constant 0 : index
    %3 = vector.load %arg1[%c0, %c0_1] : memref<8x16xf32, #tpu.memory_space<vmem>>, vector<8x16xf32>
    %c0_2 = arith.constant 0 : index
    %c0_3 = arith.constant 0 : index
    %4 = vector.load %arg2[%c0_2, %c0_3] : memref<1x16xf32, #tpu.memory_space<vmem>>, vector<1x16xf32>
    %cst = arith.constant dense<0.000000e+00> : vector<16xf32>
    %5 = vector.multi_reduction <add>, %3, %cst [0] : vector<8x16xf32> to vector<16xf32>
    %6 = vector.shape_cast %5 : vector<16xf32> to vector<1x16xf32>
    %7 = arith.addf %4, %6 : vector<1x16xf32>
    %c0_4 = arith.constant 0 : index
    %c0_5 = arith.constant 0 : index
    %8 = vector.load %arg2[%c0_4, %c0_5] : memref<1x16xf32, #tpu.memory_space<vmem>>, vector<1x16xf32>
    tpu.vector_store %arg2[%c0_4, %c0_5], %7 {strides = array<i32>} : memref<1x16xf32, #tpu.memory_space<vmem>>, vector<1x16xf32>,
    %c0_6 = arith.constant 0 : index
    %c0_7 = arith.constant 0 : index
    %9 = vector.load %arg3[%c0_6, %c0_7] : memref<1x16xf32, #tpu.memory_space<vmem>>, vector<1x16xf32>
    %10 = arith.mulf %3, %3 : vector<8x16xf32>
    %cst_8 = arith.constant dense<0.000000e+00> : vector<16xf32>
    %11 = vector.multi_reduction <add>, %10, %cst_8 [0] : vector<8x16xf32> to vector<16xf32>
    %12 = vector.shape_cast %11 : vector<16xf32> to vector<1x16xf32>
    %13 = arith.addf %9, %12 : vector<1x16xf32>
    %c0_9 = arith.constant 0 : index
    %c0_10 = arith.constant 0 : index
    %14 = vector.load %arg3[%c0_9, %c0_10] : memref<1x16xf32, #tpu.memory_space<vmem>>, vector<1x16xf32>
    tpu.vector_store %arg3[%c0_9, %c0_10], %13 {strides = array<i32>} : memref<1x16xf32, #tpu.memory_space<vmem>>, vector<1x16xf32>,
    return
  }
  func.func @transform_0(%arg0: i32) -> (i32, i32) {
    %c0_i32 = arith.constant 0 : i32
    %c0_i32_0 = arith.constant 0 : i32
    return %arg0, %c0_i32 : i32, i32
  }
  func.func @transform_1(%arg0: i32) -> (i32, i32) {
    %c0_i32 = arith.constant 0 : i32
    %c0_i32_0 = arith.constant 0 : i32
    %c0_i32_1 = arith.constant 0 : i32
    return %c0_i32, %c0_i32_0 : i32, i32
  }
  func.func @transform_2(%arg0: i32) -> (i32, i32) {
    %c0_i32 = arith.constant 0 : i32
    %c0_i32_0 = arith.constant 0 : i32
    %c0_i32_1 = arith.constant 0 : i32
    return %c0_i32, %c0_i32_0 : i32, i32
  }
}

module attributes {stable_mosaic.version = 11 : i64} {
  func.func @_bn_relu_matmul_kernel(%arg0: i32, %arg1: memref<8x16xf32, #tpu.memory_space<vmem>>, %arg2: memref<1x16xf32, #tpu.memory_space<vmem>>, %arg3: memref<1x16xf32, #tpu.memory_space<vmem>>, %arg4: memref<16x256xbf16, #tpu.memory_space<vmem>>, %arg5: memref<8x256xf32, #tpu.memory_space<vmem>>) attributes {dimension_semantics = [#tpu.dimension_semantics<parallel>], iteration_bounds = array<i64: 1>, scalar_prefetch = 0 : i64, scratch_operands = 0 : i64, tpu.core_type = #tpu.core_type<tc>, window_params = [{transform_indices = @transform_0, window_bounds = array<i64: 8, 16>}, {pipeline_mode = #tpu.pipeline_mode<synchronous>, transform_indices = @transform_1, window_bounds = array<i64: 1, 16>}, {pipeline_mode = #tpu.pipeline_mode<synchronous>, transform_indices = @transform_2, window_bounds = array<i64: 1, 16>}, {pipeline_mode = #tpu.pipeline_mode<synchronous>, transform_indices = @transform_3, window_bounds = array<i64: 16, 256>}, {transform_indices = @transform_4, window_bounds = array<i64: 8, 256>}]} {
    %c0 = arith.constant 0 : index
    %c0_0 = arith.constant 0 : index
    %0 = vector.load %arg1[%c0, %c0_0] : memref<8x16xf32, #tpu.memory_space<vmem>>, vector<8x16xf32>
    %c0_1 = arith.constant 0 : index
    %c0_2 = arith.constant 0 : index
    %1 = vector.load %arg2[%c0_1, %c0_2] : memref<1x16xf32, #tpu.memory_space<vmem>>, vector<1x16xf32>
    %2 = vector.broadcast %1 : vector<1x16xf32> to vector<8x16xf32>
    %3 = arith.mulf %0, %2 : vector<8x16xf32>
    %c0_3 = arith.constant 0 : index
    %c0_4 = arith.constant 0 : index
    %4 = vector.load %arg3[%c0_3, %c0_4] : memref<1x16xf32, #tpu.memory_space<vmem>>, vector<1x16xf32>
    %5 = vector.broadcast %4 : vector<1x16xf32> to vector<8x16xf32>
    %6 = arith.addf %3, %5 : vector<8x16xf32>
    %cst = arith.constant 0.000000e+00 : f32
    %7 = vector.broadcast %cst : f32 to vector<8x16xf32>
    %8 = arith.maximumf %6, %7 : vector<8x16xf32>
    %9 = arith.truncf %8 : vector<8x16xf32> to vector<8x16xbf16>
    %c0_5 = arith.constant 0 : index
    %c0_6 = arith.constant 0 : index
    %10 = vector.load %arg4[%c0_5, %c0_6] : memref<16x256xbf16, #tpu.memory_space<vmem>>, vector<16x256xbf16>
    %cst_7 = arith.constant dense<0.000000e+00> : vector<8x256xf32>
    %11 = tpu.matmul %9, %10, %cst_7 {dimension_numbers = #tpu.dot_dimension_numbers<[1], [0], [0], [1], [0, 0, 1, 1], [], []>} : vector<8x16xbf16>, vector<16x256xbf16>, vector<8x256xf32> -> vector<8x256xf32>
    %c0_8 = arith.constant 0 : index
    %c0_9 = arith.constant 0 : index
    %12 = vector.load %arg5[%c0_8, %c0_9] : memref<8x256xf32, #tpu.memory_space<vmem>>, vector<8x256xf32>
    tpu.vector_store %arg5[%c0_8, %c0_9], %11 {strides = array<i32>} : memref<8x256xf32, #tpu.memory_space<vmem>>, vector<8x256xf32>,
    return
  }
  func.func @transform_0(%arg0: i32) -> (i32, i32) {
    %c0_i32 = arith.constant 0 : i32
    %c0_i32_0 = arith.constant 0 : i32
    return %arg0, %c0_i32 : i32, i32
  }
  func.func @transform_1(%arg0: i32) -> (i32, i32) {
    %c0_i32 = arith.constant 0 : i32
    %c0_i32_0 = arith.constant 0 : i32
    %c0_i32_1 = arith.constant 0 : i32
    return %c0_i32, %c0_i32_0 : i32, i32
  }
  func.func @transform_2(%arg0: i32) -> (i32, i32) {
    %c0_i32 = arith.constant 0 : i32
    %c0_i32_0 = arith.constant 0 : i32
    %c0_i32_1 = arith.constant 0 : i32
    return %c0_i32, %c0_i32_0 : i32, i32
  }
  func.func @transform_3(%arg0: i32) -> (i32, i32) {
    %c0_i32 = arith.constant 0 : i32
    %c0_i32_0 = arith.constant 0 : i32
    %c0_i32_1 = arith.constant 0 : i32
    return %c0_i32, %c0_i32_0 : i32, i32
  }
  func.func @transform_4(%arg0: i32) -> (i32, i32) {
    %c0_i32 = arith.constant 0 : i32
    %c0_i32_0 = arith.constant 0 : i32
    return %arg0, %c0_i32 : i32, i32
  }
}

module attributes {stable_mosaic.version = 11 : i64} {
  func.func @_bn_stats_kernel(%arg0: i32, %arg1: memref<32x16xf32, #tpu.memory_space<vmem>>, %arg2: memref<1x16xf32, #tpu.memory_space<vmem>>, %arg3: memref<1x16xf32, #tpu.memory_space<vmem>>) attributes {dimension_semantics = [#tpu.dimension_semantics<arbitrary>], iteration_bounds = array<i64: 1>, scalar_prefetch = 0 : i64, scratch_operands = 0 : i64, tpu.core_type = #tpu.core_type<tc>, window_params = [{transform_indices = @transform_0, window_bounds = array<i64: 32, 16>}, {pipeline_mode = #tpu.pipeline_mode<synchronous>, transform_indices = @transform_1, window_bounds = array<i64: 1, 16>}, {pipeline_mode = #tpu.pipeline_mode<synchronous>, transform_indices = @transform_2, window_bounds = array<i64: 1, 16>}]} {
    %c0_i32 = arith.constant 0 : i32
    %0 = arith.cmpi eq, %arg0, %c0_i32 : i32
    %1 = arith.extui %0 : i1 to i32
    %c0_i32_0 = arith.constant 0 : i32
    %2 = arith.cmpi ne, %1, %c0_i32_0 : i32
    scf.if %2 {
      %cst_11 = arith.constant 0.000000e+00 : f32
      %15 = vector.broadcast %cst_11 : f32 to vector<1x16xf32>
      %c0_12 = arith.constant 0 : index
      %c0_13 = arith.constant 0 : index
      %16 = vector.load %arg2[%c0_12, %c0_13] : memref<1x16xf32, #tpu.memory_space<vmem>>, vector<1x16xf32>
      tpu.vector_store %arg2[%c0_12, %c0_13], %15 {strides = array<i32>} : memref<1x16xf32, #tpu.memory_space<vmem>>, vector<1x16xf32>,
      %cst_14 = arith.constant 0.000000e+00 : f32
      %17 = vector.broadcast %cst_14 : f32 to vector<1x16xf32>
      %c0_15 = arith.constant 0 : index
      %c0_16 = arith.constant 0 : index
      %18 = vector.load %arg3[%c0_15, %c0_16] : memref<1x16xf32, #tpu.memory_space<vmem>>, vector<1x16xf32>
      tpu.vector_store %arg3[%c0_15, %c0_16], %17 {strides = array<i32>} : memref<1x16xf32, #tpu.memory_space<vmem>>, vector<1x16xf32>,
    } else {
    }
    %c0 = arith.constant 0 : index
    %c0_1 = arith.constant 0 : index
    %3 = vector.load %arg1[%c0, %c0_1] : memref<32x16xf32, #tpu.memory_space<vmem>>, vector<32x16xf32>
    %c0_2 = arith.constant 0 : index
    %c0_3 = arith.constant 0 : index
    %4 = vector.load %arg2[%c0_2, %c0_3] : memref<1x16xf32, #tpu.memory_space<vmem>>, vector<1x16xf32>
    %cst = arith.constant dense<0.000000e+00> : vector<16xf32>
    %5 = vector.multi_reduction <add>, %3, %cst [0] : vector<32x16xf32> to vector<16xf32>
    %6 = vector.shape_cast %5 : vector<16xf32> to vector<1x16xf32>
    %7 = arith.addf %4, %6 : vector<1x16xf32>
    %c0_4 = arith.constant 0 : index
    %c0_5 = arith.constant 0 : index
    %8 = vector.load %arg2[%c0_4, %c0_5] : memref<1x16xf32, #tpu.memory_space<vmem>>, vector<1x16xf32>
    tpu.vector_store %arg2[%c0_4, %c0_5], %7 {strides = array<i32>} : memref<1x16xf32, #tpu.memory_space<vmem>>, vector<1x16xf32>,
    %c0_6 = arith.constant 0 : index
    %c0_7 = arith.constant 0 : index
    %9 = vector.load %arg3[%c0_6, %c0_7] : memref<1x16xf32, #tpu.memory_space<vmem>>, vector<1x16xf32>
    %10 = arith.mulf %3, %3 : vector<32x16xf32>
    %cst_8 = arith.constant dense<0.000000e+00> : vector<16xf32>
    %11 = vector.multi_reduction <add>, %10, %cst_8 [0] : vector<32x16xf32> to vector<16xf32>
    %12 = vector.shape_cast %11 : vector<16xf32> to vector<1x16xf32>
    %13 = arith.addf %9, %12 : vector<1x16xf32>
    %c0_9 = arith.constant 0 : index
    %c0_10 = arith.constant 0 : index
    %14 = vector.load %arg3[%c0_9, %c0_10] : memref<1x16xf32, #tpu.memory_space<vmem>>, vector<1x16xf32>
    tpu.vector_store %arg3[%c0_9, %c0_10], %13 {strides = array<i32>} : memref<1x16xf32, #tpu.memory_space<vmem>>, vector<1x16xf32>,
    return
  }
  func.func @transform_0(%arg0: i32) -> (i32, i32) {
    %c0_i32 = arith.constant 0 : i32
    %c0_i32_0 = arith.constant 0 : i32
    return %arg0, %c0_i32 : i32, i32
  }
  func.func @transform_1(%arg0: i32) -> (i32, i32) {
    %c0_i32 = arith.constant 0 : i32
    %c0_i32_0 = arith.constant 0 : i32
    %c0_i32_1 = arith.constant 0 : i32
    return %c0_i32, %c0_i32_0 : i32, i32
  }
  func.func @transform_2(%arg0: i32) -> (i32, i32) {
    %c0_i32 = arith.constant 0 : i32
    %c0_i32_0 = arith.constant 0 : i32
    %c0_i32_1 = arith.constant 0 : i32
    return %c0_i32, %c0_i32_0 : i32, i32
  }
}

module attributes {stable_mosaic.version = 11 : i64} {
  func.func @_bn_relu_matmul_kernel(%arg0: i32, %arg1: memref<32x16xf32, #tpu.memory_space<vmem>>, %arg2: memref<1x16xf32, #tpu.memory_space<vmem>>, %arg3: memref<1x16xf32, #tpu.memory_space<vmem>>, %arg4: memref<16x128xbf16, #tpu.memory_space<vmem>>, %arg5: memref<32x128xf32, #tpu.memory_space<vmem>>) attributes {dimension_semantics = [#tpu.dimension_semantics<parallel>], iteration_bounds = array<i64: 1>, scalar_prefetch = 0 : i64, scratch_operands = 0 : i64, tpu.core_type = #tpu.core_type<tc>, window_params = [{transform_indices = @transform_0, window_bounds = array<i64: 32, 16>}, {pipeline_mode = #tpu.pipeline_mode<synchronous>, transform_indices = @transform_1, window_bounds = array<i64: 1, 16>}, {pipeline_mode = #tpu.pipeline_mode<synchronous>, transform_indices = @transform_2, window_bounds = array<i64: 1, 16>}, {pipeline_mode = #tpu.pipeline_mode<synchronous>, transform_indices = @transform_3, window_bounds = array<i64: 16, 128>}, {transform_indices = @transform_4, window_bounds = array<i64: 32, 128>}]} {
    %c0 = arith.constant 0 : index
    %c0_0 = arith.constant 0 : index
    %0 = vector.load %arg1[%c0, %c0_0] : memref<32x16xf32, #tpu.memory_space<vmem>>, vector<32x16xf32>
    %c0_1 = arith.constant 0 : index
    %c0_2 = arith.constant 0 : index
    %1 = vector.load %arg2[%c0_1, %c0_2] : memref<1x16xf32, #tpu.memory_space<vmem>>, vector<1x16xf32>
    %2 = vector.broadcast %1 : vector<1x16xf32> to vector<32x16xf32>
    %3 = arith.mulf %0, %2 : vector<32x16xf32>
    %c0_3 = arith.constant 0 : index
    %c0_4 = arith.constant 0 : index
    %4 = vector.load %arg3[%c0_3, %c0_4] : memref<1x16xf32, #tpu.memory_space<vmem>>, vector<1x16xf32>
    %5 = vector.broadcast %4 : vector<1x16xf32> to vector<32x16xf32>
    %6 = arith.addf %3, %5 : vector<32x16xf32>
    %cst = arith.constant 0.000000e+00 : f32
    %7 = vector.broadcast %cst : f32 to vector<32x16xf32>
    %8 = arith.maximumf %6, %7 : vector<32x16xf32>
    %9 = arith.truncf %8 : vector<32x16xf32> to vector<32x16xbf16>
    %c0_5 = arith.constant 0 : index
    %c0_6 = arith.constant 0 : index
    %10 = vector.load %arg4[%c0_5, %c0_6] : memref<16x128xbf16, #tpu.memory_space<vmem>>, vector<16x128xbf16>
    %cst_7 = arith.constant dense<0.000000e+00> : vector<32x128xf32>
    %11 = tpu.matmul %9, %10, %cst_7 {dimension_numbers = #tpu.dot_dimension_numbers<[1], [0], [0], [1], [0, 0, 1, 1], [], []>} : vector<32x16xbf16>, vector<16x128xbf16>, vector<32x128xf32> -> vector<32x128xf32>
    %c0_8 = arith.constant 0 : index
    %c0_9 = arith.constant 0 : index
    %12 = vector.load %arg5[%c0_8, %c0_9] : memref<32x128xf32, #tpu.memory_space<vmem>>, vector<32x128xf32>
    tpu.vector_store %arg5[%c0_8, %c0_9], %11 {strides = array<i32>} : memref<32x128xf32, #tpu.memory_space<vmem>>, vector<32x128xf32>,
    return
  }
  func.func @transform_0(%arg0: i32) -> (i32, i32) {
    %c0_i32 = arith.constant 0 : i32
    %c0_i32_0 = arith.constant 0 : i32
    return %arg0, %c0_i32 : i32, i32
  }
  func.func @transform_1(%arg0: i32) -> (i32, i32) {
    %c0_i32 = arith.constant 0 : i32
    %c0_i32_0 = arith.constant 0 : i32
    %c0_i32_1 = arith.constant 0 : i32
    return %c0_i32, %c0_i32_0 : i32, i32
  }
  func.func @transform_2(%arg0: i32) -> (i32, i32) {
    %c0_i32 = arith.constant 0 : i32
    %c0_i32_0 = arith.constant 0 : i32
    %c0_i32_1 = arith.constant 0 : i32
    return %c0_i32, %c0_i32_0 : i32, i32
  }
  func.func @transform_3(%arg0: i32) -> (i32, i32) {
    %c0_i32 = arith.constant 0 : i32
    %c0_i32_0 = arith.constant 0 : i32
    %c0_i32_1 = arith.constant 0 : i32
    return %c0_i32, %c0_i32_0 : i32, i32
  }
  func.func @transform_4(%arg0: i32) -> (i32, i32) {
    %c0_i32 = arith.constant 0 : i32
    %c0_i32_0 = arith.constant 0 : i32
    return %arg0, %c0_i32 : i32, i32
  }
}

module attributes {stable_mosaic.version = 11 : i64} {
  func.func @_bn_relu_matmul_kernel(%arg0: i32, %arg1: memref<128x8xf32, #tpu.memory_space<vmem>>, %arg2: memref<1x8xf32, #tpu.memory_space<vmem>>, %arg3: memref<1x8xf32, #tpu.memory_space<vmem>>, %arg4: memref<8x48xbf16, #tpu.memory_space<vmem>>, %arg5: memref<128x48xf32, #tpu.memory_space<vmem>>) attributes {dimension_semantics = [#tpu.dimension_semantics<parallel>], iteration_bounds = array<i64: 1>, scalar_prefetch = 0 : i64, scratch_operands = 0 : i64, tpu.core_type = #tpu.core_type<tc>, window_params = [{transform_indices = @transform_0, window_bounds = array<i64: 128, 8>}, {pipeline_mode = #tpu.pipeline_mode<synchronous>, transform_indices = @transform_1, window_bounds = array<i64: 1, 8>}, {pipeline_mode = #tpu.pipeline_mode<synchronous>, transform_indices = @transform_2, window_bounds = array<i64: 1, 8>}, {pipeline_mode = #tpu.pipeline_mode<synchronous>, transform_indices = @transform_3, window_bounds = array<i64: 8, 48>}, {transform_indices = @transform_4, window_bounds = array<i64: 128, 48>}]} {
    %c0 = arith.constant 0 : index
    %c0_0 = arith.constant 0 : index
    %0 = vector.load %arg1[%c0, %c0_0] : memref<128x8xf32, #tpu.memory_space<vmem>>, vector<128x8xf32>
    %c0_1 = arith.constant 0 : index
    %c0_2 = arith.constant 0 : index
    %1 = vector.load %arg2[%c0_1, %c0_2] : memref<1x8xf32, #tpu.memory_space<vmem>>, vector<1x8xf32>
    %2 = vector.broadcast %1 : vector<1x8xf32> to vector<128x8xf32>
    %3 = arith.mulf %0, %2 : vector<128x8xf32>
    %c0_3 = arith.constant 0 : index
    %c0_4 = arith.constant 0 : index
    %4 = vector.load %arg3[%c0_3, %c0_4] : memref<1x8xf32, #tpu.memory_space<vmem>>, vector<1x8xf32>
    %5 = vector.broadcast %4 : vector<1x8xf32> to vector<128x8xf32>
    %6 = arith.addf %3, %5 : vector<128x8xf32>
    %cst = arith.constant 0.000000e+00 : f32
    %7 = vector.broadcast %cst : f32 to vector<128x8xf32>
    %8 = arith.maximumf %6, %7 : vector<128x8xf32>
    %9 = arith.truncf %8 : vector<128x8xf32> to vector<128x8xbf16>
    %c0_5 = arith.constant 0 : index
    %c0_6 = arith.constant 0 : index
    %10 = vector.load %arg4[%c0_5, %c0_6] : memref<8x48xbf16, #tpu.memory_space<vmem>>, vector<8x48xbf16>
    %cst_7 = arith.constant dense<0.000000e+00> : vector<128x48xf32>
    %11 = tpu.matmul %9, %10, %cst_7 {dimension_numbers = #tpu.dot_dimension_numbers<[1], [0], [0], [1], [0, 0, 1, 1], [], []>} : vector<128x8xbf16>, vector<8x48xbf16>, vector<128x48xf32> -> vector<128x48xf32>
    %c0_8 = arith.constant 0 : index
    %c0_9 = arith.constant 0 : index
    %12 = vector.load %arg5[%c0_8, %c0_9] : memref<128x48xf32, #tpu.memory_space<vmem>>, vector<128x48xf32>
    tpu.vector_store %arg5[%c0_8, %c0_9], %11 {strides = array<i32>} : memref<128x48xf32, #tpu.memory_space<vmem>>, vector<128x48xf32>,
    return
  }
  func.func @transform_0(%arg0: i32) -> (i32, i32) {
    %c0_i32 = arith.constant 0 : i32
    %c0_i32_0 = arith.constant 0 : i32
    return %arg0, %c0_i32 : i32, i32
  }
  func.func @transform_1(%arg0: i32) -> (i32, i32) {
    %c0_i32 = arith.constant 0 : i32
    %c0_i32_0 = arith.constant 0 : i32
    %c0_i32_1 = arith.constant 0 : i32
    return %c0_i32, %c0_i32_0 : i32, i32
  }
  func.func @transform_2(%arg0: i32) -> (i32, i32) {
    %c0_i32 = arith.constant 0 : i32
    %c0_i32_0 = arith.constant 0 : i32
    %c0_i32_1 = arith.constant 0 : i32
    return %c0_i32, %c0_i32_0 : i32, i32
  }
  func.func @transform_3(%arg0: i32) -> (i32, i32) {
    %c0_i32 = arith.constant 0 : i32
    %c0_i32_0 = arith.constant 0 : i32
    %c0_i32_1 = arith.constant 0 : i32
    return %c0_i32, %c0_i32_0 : i32, i32
  }
  func.func @transform_4(%arg0: i32) -> (i32, i32) {
    %c0_i32 = arith.constant 0 : i32
    %c0_i32_0 = arith.constant 0 : i32
    return %arg0, %c0_i32 : i32, i32
  }
}

module attributes {stable_mosaic.version = 11 : i64} {
  func.func @_bn_stats_kernel(%arg0: i32, %arg1: memref<128x8xf32, #tpu.memory_space<vmem>>, %arg2: memref<1x8xf32, #tpu.memory_space<vmem>>, %arg3: memref<1x8xf32, #tpu.memory_space<vmem>>) attributes {dimension_semantics = [#tpu.dimension_semantics<arbitrary>], iteration_bounds = array<i64: 1>, scalar_prefetch = 0 : i64, scratch_operands = 0 : i64, tpu.core_type = #tpu.core_type<tc>, window_params = [{transform_indices = @transform_0, window_bounds = array<i64: 128, 8>}, {pipeline_mode = #tpu.pipeline_mode<synchronous>, transform_indices = @transform_1, window_bounds = array<i64: 1, 8>}, {pipeline_mode = #tpu.pipeline_mode<synchronous>, transform_indices = @transform_2, window_bounds = array<i64: 1, 8>}]} {
    %c0_i32 = arith.constant 0 : i32
    %0 = arith.cmpi eq, %arg0, %c0_i32 : i32
    %1 = arith.extui %0 : i1 to i32
    %c0_i32_0 = arith.constant 0 : i32
    %2 = arith.cmpi ne, %1, %c0_i32_0 : i32
    scf.if %2 {
      %cst_11 = arith.constant 0.000000e+00 : f32
      %15 = vector.broadcast %cst_11 : f32 to vector<1x8xf32>
      %c0_12 = arith.constant 0 : index
      %c0_13 = arith.constant 0 : index
      %16 = vector.load %arg2[%c0_12, %c0_13] : memref<1x8xf32, #tpu.memory_space<vmem>>, vector<1x8xf32>
      tpu.vector_store %arg2[%c0_12, %c0_13], %15 {strides = array<i32>} : memref<1x8xf32, #tpu.memory_space<vmem>>, vector<1x8xf32>,
      %cst_14 = arith.constant 0.000000e+00 : f32
      %17 = vector.broadcast %cst_14 : f32 to vector<1x8xf32>
      %c0_15 = arith.constant 0 : index
      %c0_16 = arith.constant 0 : index
      %18 = vector.load %arg3[%c0_15, %c0_16] : memref<1x8xf32, #tpu.memory_space<vmem>>, vector<1x8xf32>
      tpu.vector_store %arg3[%c0_15, %c0_16], %17 {strides = array<i32>} : memref<1x8xf32, #tpu.memory_space<vmem>>, vector<1x8xf32>,
    } else {
    }
    %c0 = arith.constant 0 : index
    %c0_1 = arith.constant 0 : index
    %3 = vector.load %arg1[%c0, %c0_1] : memref<128x8xf32, #tpu.memory_space<vmem>>, vector<128x8xf32>
    %c0_2 = arith.constant 0 : index
    %c0_3 = arith.constant 0 : index
    %4 = vector.load %arg2[%c0_2, %c0_3] : memref<1x8xf32, #tpu.memory_space<vmem>>, vector<1x8xf32>
    %cst = arith.constant dense<0.000000e+00> : vector<8xf32>
    %5 = vector.multi_reduction <add>, %3, %cst [0] : vector<128x8xf32> to vector<8xf32>
    %6 = vector.shape_cast %5 : vector<8xf32> to vector<1x8xf32>
    %7 = arith.addf %4, %6 : vector<1x8xf32>
    %c0_4 = arith.constant 0 : index
    %c0_5 = arith.constant 0 : index
    %8 = vector.load %arg2[%c0_4, %c0_5] : memref<1x8xf32, #tpu.memory_space<vmem>>, vector<1x8xf32>
    tpu.vector_store %arg2[%c0_4, %c0_5], %7 {strides = array<i32>} : memref<1x8xf32, #tpu.memory_space<vmem>>, vector<1x8xf32>,
    %c0_6 = arith.constant 0 : index
    %c0_7 = arith.constant 0 : index
    %9 = vector.load %arg3[%c0_6, %c0_7] : memref<1x8xf32, #tpu.memory_space<vmem>>, vector<1x8xf32>
    %10 = arith.mulf %3, %3 : vector<128x8xf32>
    %cst_8 = arith.constant dense<0.000000e+00> : vector<8xf32>
    %11 = vector.multi_reduction <add>, %10, %cst_8 [0] : vector<128x8xf32> to vector<8xf32>
    %12 = vector.shape_cast %11 : vector<8xf32> to vector<1x8xf32>
    %13 = arith.addf %9, %12 : vector<1x8xf32>
    %c0_9 = arith.constant 0 : index
    %c0_10 = arith.constant 0 : index
    %14 = vector.load %arg3[%c0_9, %c0_10] : memref<1x8xf32, #tpu.memory_space<vmem>>, vector<1x8xf32>
    tpu.vector_store %arg3[%c0_9, %c0_10], %13 {strides = array<i32>} : memref<1x8xf32, #tpu.memory_space<vmem>>, vector<1x8xf32>,
    return
  }
  func.func @transform_0(%arg0: i32) -> (i32, i32) {
    %c0_i32 = arith.constant 0 : i32
    %c0_i32_0 = arith.constant 0 : i32
    return %arg0, %c0_i32 : i32, i32
  }
  func.func @transform_1(%arg0: i32) -> (i32, i32) {
    %c0_i32 = arith.constant 0 : i32
    %c0_i32_0 = arith.constant 0 : i32
    %c0_i32_1 = arith.constant 0 : i32
    return %c0_i32, %c0_i32_0 : i32, i32
  }
  func.func @transform_2(%arg0: i32) -> (i32, i32) {
    %c0_i32 = arith.constant 0 : i32
    %c0_i32_0 = arith.constant 0 : i32
    %c0_i32_1 = arith.constant 0 : i32
    return %c0_i32, %c0_i32_0 : i32, i32
  }
}

module attributes {stable_mosaic.version = 11 : i64} {
  func.func @_sigmoid_kernel(%arg0: i32, %arg1: memref<16x128xf32, #tpu.memory_space<vmem>>, %arg2: memref<16x128xf32, #tpu.memory_space<vmem>>) attributes {dimension_semantics = [#tpu.dimension_semantics<parallel>], iteration_bounds = array<i64: 1>, scalar_prefetch = 0 : i64, scratch_operands = 0 : i64, tpu.core_type = #tpu.core_type<tc>, window_params = [{transform_indices = @transform_0, window_bounds = array<i64: 16, 128>}, {transform_indices = @transform_1, window_bounds = array<i64: 16, 128>}]} {
    %c0 = arith.constant 0 : index
    %c0_0 = arith.constant 0 : index
    %0 = vector.load %arg1[%c0, %c0_0] : memref<16x128xf32, #tpu.memory_space<vmem>>, vector<16x128xf32>
    %cst = arith.constant 0.000000e+00 : f32
    %1 = vector.broadcast %cst : f32 to vector<16x128xf32>
    %2 = arith.subf %1, %0 : vector<16x128xf32>
    %3 = math.exp %2 : vector<16x128xf32>
    %cst_1 = arith.constant 1.000000e+00 : f32
    %4 = vector.broadcast %cst_1 : f32 to vector<16x128xf32>
    %5 = arith.addf %4, %3 : vector<16x128xf32>
    %6 = tpu.reciprocal %5 {approx = true} : vector<16x128xf32> -> vector<16x128xf32>
    %c0_2 = arith.constant 0 : index
    %c0_3 = arith.constant 0 : index
    %7 = vector.load %arg2[%c0_2, %c0_3] : memref<16x128xf32, #tpu.memory_space<vmem>>, vector<16x128xf32>
    tpu.vector_store %arg2[%c0_2, %c0_3], %6 {strides = array<i32>} : memref<16x128xf32, #tpu.memory_space<vmem>>, vector<16x128xf32>,
    return
  }
  func.func @transform_0(%arg0: i32) -> (i32, i32) {
    %c0_i32 = arith.constant 0 : i32
    %c0_i32_0 = arith.constant 0 : i32
    return %arg0, %c0_i32 : i32, i32
  }
  func.func @transform_1(%arg0: i32) -> (i32, i32) {
    %c0_i32 = arith.constant 0 : i32
    %c0_i32_0 = arith.constant 0 : i32
    return %arg0, %c0_i32 : i32, i32
  }
}

</mosaic_0001>

<bundles_post_ra>
// kernel: _forward_impl.11
= control target key start
LH: loop header
LB: loop body
LE: loop exit
PB: predicated region body
PF: predicated region fallthrough
CT: control target
= control target key end

     0   :  { %vm14_vm0 = vcmask 253952   ;;  %vm19_vm1 = vcmask 261120   ;;  %v50_v0 = vmov 0.0   ;;  %s91_s0 = inlined_call_operand.vmem [shape: f32[8,32], index: 0, kind: input, shape index: {}]   ;;  %s92_s1 = inlined_call_operand.vmem [shape: f32[1,32], index: 1, kind: output, shape index: {0}]   ;;  %s93_s2 = inlined_call_operand.vmem [shape: f32[1,32], index: 2, kind: output, shape index: {1}]  }
   0x1   :  { %15 = vst.msk [vmem:[%s92_s1] sm:$0x1] %vm14_vm0, %v50_v0  ;;  %v17_v1 = vld [vmem:[%s91_s0] sm:$0xff]  ;;  %16 = vst.msk [vmem:[%s93_s2] sm:$0x1] %vm14_vm0, %v50_v0 }
   0x2   :  { %v20_v2 = vsel %vm19_vm1, %v17_v1, 0.0  ;;  %v31_v3 = vmul.f32 %v17_v1, %v17_v1 }
   0x3   :  { %v21_v4 = vrot.slane %v20_v2, 4 }
   0x4   :  { %v32_v5 = vsel %vm19_vm1, %v31_v3, 0.0 }
   0x5   :  { %v22_v6 = vadd.f32 %v21_v4, %v20_v2  ;;  %v33_v7 = vrot.slane %v32_v5, 4 }
   0x7   :  { %v23_v8 = vrot.slane %v22_v6, 2  ;;  %v34_v9 = vadd.f32 %v33_v7, %v32_v5 }
   0x8   :  { %v18_v14 = vld [vmem:[%s92_s1] sm:$0x1] }
   0x9   :  { %v24_v10 = vadd.f32 %v23_v8, %v22_v6  ;;  %v35_v11 = vrot.slane %v34_v9, 2  ;;  %v30_v17 = vld [vmem:[%s93_s2] sm:$0x1] }
   0xb   :  { %v25_v12 = vrot.slane %v24_v10, 1  ;;  %v36_v13 = vadd.f32 %v35_v11, %v34_v9 }
   0xd   :  { %v26_v15 = vadd.f32 %v25_v12, %v24_v10  ;;  %v37_v16 = vrot.slane %v36_v13, 1 }
   0xf   :  { %v27_v18 = vadd.f32 %v26_v15, %v18_v14  ;;  %v38_v19 = vadd.f32 %v37_v16, %v36_v13 }
  0x11   :  { %29 = vst.msk [vmem:[%s92_s1] sm:$0x1] %vm14_vm0, %v27_v18  ;;  %v39_v20 = vadd.f32 %v38_v19, %v30_v17 }
  0x13   :  { %40 = vst.msk [vmem:[%s93_s2] sm:$0x1] %vm14_vm0, %v39_v20 }

// kernel: _forward_impl.10
= control target key start
LH: loop header
LB: loop body
LE: loop exit
PB: predicated region body
PF: predicated region fallthrough
CT: control target
= control target key end

     0   :  { %vm19_vm0 = vcmask 1041408   ;;  %v80_v0 = vmov 0.0   ;;  %vm81_vm1 = vmmov 0   ;;  %vm15_vm2 = vcmask 31744   ;;  %s106_s1 = inlined_call_operand.vmem [shape: bf16[4,32], index: 1, kind: input, shape index: {}]   ;;  %s107_s0 = inlined_call_operand.vmem [shape: f32[8,4], index: 0, kind: input, shape index: {}]   ;;  %s108_s2 = inlined_call_operand.vmem [shape: f32[8,32], index: 2, kind: output, shape index: {}]  }
   0x1   :  { %72 = vmatprep.subr.bf16.mxu0 %v80_v0  ;;  %v14_v1 = vld [vmem:[%s106_s1] sm:$0x3]  ;;  %74 = vmatprep.mubr.msk.bf16.mxu0 %vm81_vm1, %v80_v0  ;;  %vm63_vm3 = vcmask 261120  }
   0x2   :  { %v12_v2 = vld [vmem:[%s107_s0] sm:$0xff]  ;;  %v21_v3 = vsel %vm19_vm0, %v14_v1, 0 }
   0x3   :  { %v13_v4 = vpack.c.bf16 %v12_v2, %v12_v2  ;;  %73 = vmatpush3.bf16.msra.mxu0 %v21_v3 }
   0x6   :  { %75 = vmatmul.mubr.msk.bf16.vlgmr.msra.gmra.mxu0 %vm15_vm2, %v13_v4 }
  0xc6   :  { %v57_v5 = vpop.f32.mrf.mxu0 }
  0xc7   :  { %64 = vst.msk [vmem:[%s108_s2] sm:$0xff] %vm63_vm3, %v57_v5 }
  0xc8   :  { %v76_v6 = vpop.f32.mrf.mxu0 }
  0xca   :  { %v60_v7 = vpop.f32.mrf.mxu0 }
  0xcc   :  { %v77_v8 = vpop.f32.mrf.mxu0 }

// kernel: _forward_impl.12
= control target key start
LH: loop header
LB: loop body
LE: loop exit
PB: predicated region body
PF: predicated region fallthrough
CT: control target
= control target key end

     0   :  { %v127_v1 = vmov 0   ;;  %vm61_vm0 = vcmask 261120   ;;  %vm107_vm1 = vcmask 130048   ;;  %s180_s3 = inlined_call_operand.vmem [shape: bf16[32,144], index: 3, kind: input, shape index: {}]   ;;  %s181_s0 = inlined_call_operand.vmem [shape: f32[8,32], index: 0, kind: input, shape index: {}]   ;;  %s182_s1 = inlined_call_operand.vmem [shape: f32[1,32], index: 1, kind: input, shape index: {}]   ;;  %s183_s2 = inlined_call_operand.vmem [shape: f32[1,32], index: 2, kind: input, shape index: {}]   ;;  %s184_s4 = inlined_call_operand.vmem [shape: f32[8,144], index: 4, kind: output, shape index: {}]  }
   0x1   :  { %v121_v0 = vld [vmem:[%s180_s3 + $0x14] ss:$8 sps:$4 sm:$0xff]   ;;  %97 = vmatprep.mubr.bf16.mxu0 %v127_v1  ;;  %v123_v2 = vld [vmem:[%s180_s3 + $0x10] ss:$8 sps:$4 sm:$0xff]   ;;  %v124_v3 = vld [vmem:[%s180_s3 + $0x4] ss:$8 sps:$4 sm:$0xff]  }
   0x2   :  { %77 = vmatprep.subr.bf16.mxu0 %v121_v0  ;;  %v18_v4 = vld [vmem:[%s181_s0] sm:$0xff] }
   0x3   :  { %78 = vmatpush1.bf16.msra.mxu0 %v123_v2  ;;  %v126_v5 = vld [vmem:[%s180_s3] ss:$8 sps:$4 sm:$0xff]  }
   0x4   :  { %v113_v6 = vld [vmem:[%s182_s1] ss:$0 sm:$0xff]  ;;  %79 = vmatprep.subr.bf16.mxu0 %v124_v3 }
   0x5   :  { %v114_v7 = vld [vmem:[%s183_s2] ss:$0 sm:$0xff]  ;;  %v26_v8 = vmul.f32 %v113_v6, %v18_v4 }
   0x7   :  { %v34_v9 = vadd.f32 %v114_v7, %v26_v8  ;;  %80 = vmatpush1.bf16.msra.mxu0 %v126_v5 }
   0x9   :  { %v35_v10 = vmax.f32 %v34_v9, 0.0 }
   0xb   :  { %v36_v11 = vpack.c.bf16 %v35_v10, %v35_v10 }
   0xd   :  { %119 = vmatmul.mubr.msk.bf16.vlgmr.msra.gmra.mxu0 %vm61_vm0, %v36_v11 }
  0xcd   :  { %v99_v12 = vpop.f32.mrf.mxu0 }
  0xce   :  { %106 = vst [vmem:[%s184_s4] sm:$0xff] %v99_v12 }
  0xcf   :  { %v101_v13 = vpop.f32.mrf.mxu0 }
  0xd0   :  { %108 = vst.msk [vmem:[%s184_s4 + $0x8] sm:$0xff] %vm107_vm1, %v101_v13 }
  0xd1   :  { %v103_v14 = vpop.f32.mrf.mxu0 }
  0xd3   :  { %v104_v15 = vpop.f32.mrf.mxu0 }

// kernel: _forward_impl.13
= control target key start
LH: loop header
LB: loop body
LE: loop exit
PB: predicated region body
PF: predicated region fallthrough
CT: control target
= control target key end

     0   :  { %vm14_vm0 = vcmask 122880   ;;  %vm19_vm1 = vcmask 130048   ;;  %v50_v0 = vmov 0.0   ;;  %s91_s0 = inlined_call_operand.vmem [shape: f32[8,16], index: 0, kind: input, shape index: {}]   ;;  %s92_s1 = inlined_call_operand.vmem [shape: f32[1,16], index: 1, kind: output, shape index: {0}]   ;;  %s93_s2 = inlined_call_operand.vmem [shape: f32[1,16], index: 2, kind: output, shape index: {1}]  }
   0x1   :  { %15 = vst.msk [vmem:[%s92_s1] sm:$0x1] %vm14_vm0, %v50_v0  ;;  %v17_v1 = vld [vmem:[%s91_s0] sm:$0xff]  ;;  %16 = vst.msk [vmem:[%s93_s2] sm:$0x1] %vm14_vm0, %v50_v0 }
   0x2   :  { %v20_v2 = vsel %vm19_vm1, %v17_v1, 0.0  ;;  %v31_v3 = vmul.f32 %v17_v1, %v17_v1 }
   0x3   :  { %v21_v4 = vrot.slane %v20_v2, 4 }
   0x4   :  { %v32_v5 = vsel %vm19_vm1, %v31_v3, 0.0 }
   0x5   :  { %v22_v6 = vadd.f32 %v21_v4, %v20_v2  ;;  %v33_v7 = vrot.slane %v32_v5, 4 }
   0x7   :  { %v23_v8 = vrot.slane %v22_v6, 2  ;;  %v34_v9 = vadd.f32 %v33_v7, %v32_v5 }
   0x8   :  { %v18_v14 = vld [vmem:[%s92_s1] sm:$0x1] }
   0x9   :  { %v24_v10 = vadd.f32 %v23_v8, %v22_v6  ;;  %v35_v11 = vrot.slane %v34_v9, 2  ;;  %v30_v17 = vld [vmem:[%s93_s2] sm:$0x1] }
   0xb   :  { %v25_v12 = vrot.slane %v24_v10, 1  ;;  %v36_v13 = vadd.f32 %v35_v11, %v34_v9 }
   0xd   :  { %v26_v15 = vadd.f32 %v25_v12, %v24_v10  ;;  %v37_v16 = vrot.slane %v36_v13, 1 }
   0xf   :  { %v27_v18 = vadd.f32 %v26_v15, %v18_v14  ;;  %v38_v19 = vadd.f32 %v37_v16, %v36_v13 }
  0x11   :  { %29 = vst.msk [vmem:[%s92_s1] sm:$0x1] %vm14_vm0, %v27_v18  ;;  %v39_v20 = vadd.f32 %v38_v19, %v30_v17 }
  0x13   :  { %40 = vst.msk [vmem:[%s93_s2] sm:$0x1] %vm14_vm0, %v39_v20 }

// kernel: _forward_impl.14
= control target key start
LH: loop header
LB: loop body
LE: loop exit
PB: predicated region body
PF: predicated region fallthrough
CT: control target
= control target key end

     0   :  { %v109_v1 = vmov 0   ;;  %vm49_vm0 = vcmask 130048   ;;  %s156_s3 = inlined_call_operand.vmem [shape: bf16[16,256], index: 3, kind: input, shape index: {}]   ;;  %s157_s0 = inlined_call_operand.vmem [shape: f32[8,16], index: 0, kind: input, shape index: {}]   ;;  %s158_s1 = inlined_call_operand.vmem [shape: f32[1,16], index: 1, kind: input, shape index: {}]   ;;  %s159_s2 = inlined_call_operand.vmem [shape: f32[1,16], index: 2, kind: input, shape index: {}]   ;;  %s160_s4 = inlined_call_operand.vmem [shape: f32[8,256], index: 4, kind: output, shape index: {}]  }
   0x1   :  { %v106_v0 = vld [vmem:[%s156_s3 + $0x4] ss:$8 sps:$4 sm:$0xff]   ;;  %85 = vmatprep.mubr.bf16.mxu0 %v109_v1  ;;  %v108_v2 = vld [vmem:[%s156_s3] ss:$8 sps:$4 sm:$0xff]  }
   0x2   :  { %v18_v3 = vld [vmem:[%s157_s0] sm:$0xff]  ;;  %67 = vmatprep.subr.bf16.mxu0 %v106_v0 }
   0x3   :  { %v100_v4 = vld [vmem:[%s158_s1] ss:$0 sm:$0xff]  ;;  %68 = vmatpush1.bf16.msra.mxu0 %v108_v2 }
   0x4   :  { %v26_v5 = vmul.f32 %v100_v4, %v18_v3  ;;  %v101_v6 = vld [vmem:[%s159_s2] ss:$0 sm:$0xff] }
   0x6   :  { %v34_v7 = vadd.f32 %v101_v6, %v26_v5 }
   0x8   :  { %v35_v8 = vmax.f32 %v34_v7, 0.0 }
   0xa   :  { %v36_v9 = vpack.c.bf16 %v35_v8, %v35_v8 }
   0xc   :  { %104 = vmatmul.mubr.msk.bf16.vlgmr.msra.gmra.mxu0 %vm49_vm0, %v36_v9 }
  0xcc   :  { %v87_v10 = vpop.f32.mrf.mxu0 }
  0xcd   :  { %94 = vst [vmem:[%s160_s4] sm:$0xff] %v87_v10 }
  0xce   :  { %v89_v11 = vpop.f32.mrf.mxu0 }
  0xcf   :  { %95 = vst [vmem:[%s160_s4 + $0x8] sm:$0xff] %v89_v11 }
  0xd0   :  { %v91_v12 = vpop.f32.mrf.mxu0 }
  0xd2   :  { %v92_v13 = vpop.f32.mrf.mxu0 }

// kernel: _forward_impl.15
= control target key start
LH: loop header
LB: loop body
LE: loop exit
PB: predicated region body
PF: predicated region fallthrough
CT: control target
= control target key end

     0   :  { %vm14_vm0 = vcmask 122880   ;;  %vm22_vm1 = vcmask 130048   ;;  %v68_v0 = vmov 0.0   ;;  %s126_s0 = inlined_call_operand.vmem [shape: f32[32,16], index: 0, kind: input, shape index: {}]   ;;  %s127_s1 = inlined_call_operand.vmem [shape: f32[1,16], index: 1, kind: output, shape index: {0}]   ;;  %s128_s2 = inlined_call_operand.vmem [shape: f32[1,16], index: 2, kind: output, shape index: {1}]  }
   0x1   :  { %15 = vst.msk [vmem:[%s127_s1] sm:$0x1] %vm14_vm0, %v68_v0  ;;  %v17_v1 = vld [vmem:[%s126_s0] sm:$0xff]  ;;  %v18_v2 = vld [vmem:[%s126_s0 + $0x8] sm:$0xff]  ;;  %v19_v3 = vld [vmem:[%s126_s0 + $0x10] sm:$0xff] }
   0x2   :  { %16 = vst.msk [vmem:[%s128_s2] sm:$0x1] %vm14_vm0, %v68_v0  ;;  %v20_v4 = vld [vmem:[%s126_s0 + $0x18] sm:$0xff]  ;;  %v23_v5 = vsel %vm22_vm1, %v17_v1, 0.0  ;;  %v24_v6 = vsel %vm22_vm1, %v18_v2, 0.0  ;;  %v26_v7 = vsel %vm22_vm1, %v19_v3, 0.0  ;;  %v40_v8 = vmul.f32 %v17_v1, %v17_v1 }
   0x3   :  { %v25_v9 = vadd.f32 %v24_v6, %v23_v5  ;;  %v41_v10 = vmul.f32 %v18_v2, %v18_v2  ;;  %v42_v11 = vmul.f32 %v19_v3, %v19_v3  ;;  %v28_v12 = vsel %vm22_vm1, %v20_v4, 0.0 }
   0x4   :  { %v43_v13 = vmul.f32 %v20_v4, %v20_v4  ;;  %v44_v14 = vsel %vm22_vm1, %v40_v8, 0.0 }
   0x5   :  { %v27_v15 = vadd.f32 %v26_v7, %v25_v9  ;;  %v45_v16 = vsel %vm22_vm1, %v41_v10, 0.0  ;;  %v47_v17 = vsel %vm22_vm1, %v42_v11, 0.0 }
   0x6   :  { %v46_v18 = vadd.f32 %v45_v16, %v44_v14  ;;  %v49_v20 = vsel %vm22_vm1, %v43_v13, 0.0 }
   0x7   :  { %v29_v19 = vadd.f32 %v28_v12, %v27_v15 }
   0x8   :  { %v48_v21 = vadd.f32 %v47_v17, %v46_v18  ;;  %v21_v31 = vld [vmem:[%s127_s1] sm:$0x1] }
   0x9   :  { %v30_v22 = vrot.slane %v29_v19, 4  ;;  %v39_v36 = vld [vmem:[%s128_s2] sm:$0x1] }
   0xa   :  { %v50_v23 = vadd.f32 %v49_v20, %v48_v21 }
   0xb   :  { %v31_v24 = vadd.f32 %v30_v22, %v29_v19 }
   0xc   :  { %v51_v25 = vrot.slane %v50_v23, 4 }
   0xd   :  { %v32_v26 = vrot.slane %v31_v24, 2 }
   0xe   :  { %v52_v27 = vadd.f32 %v51_v25, %v50_v23 }
   0xf   :  { %v33_v28 = vadd.f32 %v32_v26, %v31_v24 }
  0x10   :  { %v53_v29 = vrot.slane %v52_v27, 2 }
  0x11   :  { %v34_v30 = vrot.slane %v33_v28, 1 }
  0x12   :  { %v54_v32 = vadd.f32 %v53_v29, %v52_v27 }
  0x13   :  { %v35_v33 = vadd.f32 %v34_v30, %v33_v28 }
  0x14   :  { %v55_v34 = vrot.slane %v54_v32, 1 }
  0x15   :  { %v36_v35 = vadd.f32 %v35_v33, %v21_v31 }
  0x16   :  { %v56_v37 = vadd.f32 %v55_v34, %v54_v32 }
  0x17   :  { %38 = vst.msk [vmem:[%s127_s1] sm:$0x1] %vm14_vm0, %v36_v35 }
  0x18   :  { %v57_v38 = vadd.f32 %v56_v37, %v39_v36 }
  0x1a   :  { %58 = vst.msk [vmem:[%s128_s2] sm:$0x1] %vm14_vm0, %v57_v38 }

// kernel: _forward_impl.16
= control target key start
LH: loop header
LB: loop body
LE: loop exit
PB: predicated region body
PF: predicated region fallthrough
CT: control target
= control target key end

     0   :  { %vm58_vm0 = vcmask 130048   ;;  %s195_s3 = inlined_call_operand.vmem [shape: bf16[16,128], index: 3, kind: input, shape index: {}]   ;;  %s196_s0 = inlined_call_operand.vmem [shape: f32[32,16], index: 0, kind: input, shape index: {}]   ;;  %s197_s1 = inlined_call_operand.vmem [shape: f32[1,16], index: 1, kind: input, shape index: {}]   ;;  %s198_s2 = inlined_call_operand.vmem [shape: f32[1,16], index: 2, kind: input, shape index: {}]   ;;  %s199_s4 = inlined_call_operand.vmem [shape: f32[32,128], index: 4, kind: output, shape index: {}]  }
   0x1   :  { %v136_v0 = vld [vmem:[%s195_s3] sm:$0xff]   ;;  %v19_v2 = vld [vmem:[%s196_s0 + $0x8] sm:$0xff]  ;;  %v20_v7 = vld [vmem:[%s196_s0 + $0x10] sm:$0xff] }
   0x2   :  { %v18_v1 = vld [vmem:[%s196_s0] sm:$0xff]  ;;  %130 = vmatprep.subr.bf16.mxu0 %v136_v0  ;;  %v21_v8 = vld [vmem:[%s196_s0 + $0x18] sm:$0xff] }
   0x3   :  { %v122_v3 = vld [vmem:[%s197_s1] ss:$0 sm:$0xff]  ;;  %131 = vmatpush3.bf16.msra.mxu0 %v136_v0 }
   0x4   :  { %v29_v4 = vmul.f32 %v122_v3, %v18_v1  ;;  %v30_v5 = vmul.f32 %v122_v3, %v19_v2  ;;  %v123_v6 = vld [vmem:[%s198_s2] ss:$0 sm:$0xff]  ;;  %v31_v9 = vmul.f32 %v122_v3, %v20_v7  ;;  %v32_v10 = vmul.f32 %v122_v3, %v21_v8 }
   0x6   :  { %v40_v11 = vadd.f32 %v123_v6, %v29_v4  ;;  %v41_v12 = vadd.f32 %v123_v6, %v30_v5  ;;  %v42_v13 = vadd.f32 %v123_v6, %v31_v9  ;;  %v43_v14 = vadd.f32 %v123_v6, %v32_v10 }
   0x8   :  { %v44_v15 = vmax.f32 %v40_v11, 0.0  ;;  %v45_v16 = vmax.f32 %v41_v12, 0.0  ;;  %v46_v17 = vmax.f32 %v42_v13, 0.0  ;;  %v47_v18 = vmax.f32 %v43_v14, 0.0 }
   0xa   :  { %v48_v19 = vpack.c.bf16 %v45_v16, %v44_v15  ;;  %v49_v20 = vpack.c.bf16 %v47_v18, %v46_v17 }
   0xc   :  { %132 = vmatprep.mubr.msk.bf16.mxu0 %vm58_vm0, %v48_v19 }
   0xd   :  { %133 = vmatmul.mubr.msk.bf16.vlgmr.msra.gmra.mxu0 %vm58_vm0, %v49_v20 }
  0xcd   :  { %v134_v21 = vpop.f32.mrf.mxu0 }
  0xce   :  { %116 = vst [vmem:[%s199_s4 + $0x10] sm:$0xff] %v134_v21 }
  0xcf   :  { %v99_v22 = vpop.f32.mrf.mxu0 }
  0xd0   :  { %114 = vst [vmem:[%s199_s4] sm:$0xff] %v99_v22 }
  0xd1   :  { %v135_v23 = vpop.f32.mrf.mxu0 }
  0xd2   :  { %117 = vst [vmem:[%s199_s4 + $0x18] sm:$0xff] %v135_v23 }
  0xd3   :  { %v102_v24 = vpop.f32.mrf.mxu0 }
  0xd4   :  { %115 = vst [vmem:[%s199_s4 + $0x8] sm:$0xff] %v102_v24 }

// kernel: _forward_impl.18
= control target key start
LH: loop header
LB: loop body
LE: loop exit
PB: predicated region body
PF: predicated region fallthrough
CT: control target
= control target key end

     0   :  { %vm130_vm0 = vcmask 1043456   ;;  %vm105_vm1 = vcmask 64512   ;;  %vm231_vm2 = vcmask 392192   ;;  %s483_s3 = inlined_call_operand.vmem [shape: bf16[8,48], index: 3, kind: input, shape index: {}]   ;;  %s484_s0 = inlined_call_operand.vmem [shape: f32[128,8], index: 0, kind: input, shape index: {}]   ;;  %s485_s1 = inlined_call_operand.vmem [shape: f32[1,8], index: 1, kind: input, shape index: {}]   ;;  %s486_s2 = inlined_call_operand.vmem [shape: f32[1,8], index: 2, kind: input, shape index: {}]   ;;  %s487_s4 = inlined_call_operand.vmem [shape: f32[128,48], index: 4, kind: output, shape index: {}]  }
   0x1   :  { %v104_v0 = vld [vmem:[%s483_s3] sm:$0xf]  ;;  %v19_v2 = vld [vmem:[%s484_s0 + $0x8] sm:$0xff]  ;;  %v20_v11 = vld [vmem:[%s484_s0 + $0x10] sm:$0xff] }
   0x2   :  { %v18_v1 = vld [vmem:[%s484_s0] sm:$0xff]  ;;  %291 = vmatprep.subr.msk.bf16.mxu0 %vm130_vm0, %v104_v0  ;;  %292 = vmatprep.subr.msk.bf16.mxu1 %vm130_vm0, %v104_v0  ;;  %v132_v3 = vsel %vm130_vm0, %v104_v0, 0  ;;  %v27_v9 = vld [vmem:[%s484_s0 + $0x48] sm:$0xff]  ;;  %v21_v12 = vld [vmem:[%s484_s0 + $0x18] sm:$0xff] }
   0x3   :  { %v330_v4 = vld [vmem:[%s485_s1] ss:$0 sm:$0xff]  ;;  %272 = vmatpush3.bf16.msra.mxu0 %v132_v3  ;;  %290 = vmatpush3.bf16.msra.mxu1 %v132_v3  ;;  %v28_v16 = vld [vmem:[%s484_s0 + $0x50] sm:$0xff]  ;;  %v29_v17 = vld [vmem:[%s484_s0 + $0x58] sm:$0xff] }
   0x4   :  { %v335_v5 = vld [vmem:[%s486_s2] ss:$0 sm:$0xff]  ;;  %v41_v7 = vmul.f32 %v330_v4, %v18_v1  ;;  %v42_v8 = vmul.f32 %v330_v4, %v19_v2  ;;  %v50_v13 = vmul.f32 %v330_v4, %v27_v9  ;;  %v43_v14 = vmul.f32 %v330_v4, %v20_v11  ;;  %v23_v27 = vld [vmem:[%s484_s0 + $0x28] sm:$0xff]  ;;  %v24_v38 = vld [vmem:[%s484_s0 + $0x30] sm:$0xff] }
   0x5   :  { %v26_v6 = vld [vmem:[%s484_s0 + $0x40] sm:$0xff]  ;;  %v44_v15 = vmul.f32 %v330_v4, %v21_v12  ;;  %v51_v21 = vmul.f32 %v330_v4, %v28_v16  ;;  %v52_v25 = vmul.f32 %v330_v4, %v29_v17  ;;  %v31_v37 = vld [vmem:[%s484_s0 + $0x68] sm:$0xff]  ;;  %v46_v42 = vmul.f32 %v330_v4, %v23_v27  ;;  %v25_v43 = vld [vmem:[%s484_s0 + $0x38] sm:$0xff] }
   0x6   :  { %v49_v10 = vmul.f32 %v330_v4, %v26_v6  ;;  %v64_v18 = vadd.f32 %v335_v5, %v41_v7  ;;  %v65_v19 = vadd.f32 %v335_v5, %v42_v8  ;;  %v73_v22 = vadd.f32 %v335_v5, %v50_v13  ;;  %v22_v26 = vld [vmem:[%s484_s0 + $0x20] sm:$0xff]  ;;  %v32_v52 = vld [vmem:[%s484_s0 + $0x70] sm:$0xff]  ;;  %v33_v53 = vld [vmem:[%s484_s0 + $0x78] sm:$0xff] }
   0x7   :  { %v66_v23 = vadd.f32 %v335_v5, %v43_v14  ;;  %v67_v24 = vadd.f32 %v335_v5, %v44_v15  ;;  %v74_v31 = vadd.f32 %v335_v5, %v51_v21  ;;  %v30_v32 = vld [vmem:[%s484_s0 + $0x60] sm:$0xff]  ;;  %v75_v36 = vadd.f32 %v335_v5, %v52_v25 }
   0x8   :  { %v72_v20 = vadd.f32 %v335_v5, %v49_v10  ;;  %v80_v28 = vmax.f32 %v64_v18, 0.0  ;;  %v81_v29 = vmax.f32 %v65_v19, 0.0  ;;  %v89_v33 = vmax.f32 %v73_v22, 0.0 }
   0x9   :  { %v82_v34 = vmax.f32 %v66_v23, 0.0  ;;  %v83_v35 = vmax.f32 %v67_v24, 0.0  ;;  %v90_v40 = vmax.f32 %v74_v31, 0.0  ;;  %v45_v41 = vmul.f32 %v330_v4, %v22_v26 }
   0xa   :  { %v88_v30 = vmax.f32 %v72_v20, 0.0  ;;  %v96_v39 = vpack.c.bf16 %v81_v29, %v80_v28  ;;  %v91_v46 = vmax.f32 %v75_v36, 0.0  ;;  %v53_v47 = vmul.f32 %v330_v4, %v30_v32 }
   0xb   :  { %v97_v45 = vpack.c.bf16 %v83_v35, %v82_v34  ;;  %v68_v48 = vadd.f32 %v335_v5, %v45_v41  ;;  %v69_v49 = vadd.f32 %v335_v5, %v46_v42  ;;  %v54_v50 = vmul.f32 %v330_v4, %v31_v37 }
   0xc   :  { %v100_v44 = vpack.c.bf16 %v89_v33, %v88_v30  ;;  %273 = vmatprep.mubr.msk.bf16.mxu0 %vm105_vm1, %v96_v39  ;;  %v47_v51 = vmul.f32 %v330_v4, %v24_v38  ;;  %v101_v54 = vpack.c.bf16 %v91_v46, %v90_v40  ;;  %v76_v55 = vadd.f32 %v335_v5, %v53_v47 }
   0xd   :  { %274 = vmatmul.mubr.msk.bf16.vlgmr.msra.gmra.mxu0 %vm105_vm1, %v97_v45  ;;  %v48_v56 = vmul.f32 %v330_v4, %v25_v43  ;;  %v84_v57 = vmax.f32 %v68_v48, 0.0  ;;  %v85_v58 = vmax.f32 %v69_v49, 0.0  ;;  %v77_v59 = vadd.f32 %v335_v5, %v54_v50 }
   0xe   :  { %281 = vmatprep.mubr.msk.bf16.mxu1 %vm105_vm1, %v100_v44  ;;  %v70_v60 = vadd.f32 %v335_v5, %v47_v51  ;;  %v92_v61 = vmax.f32 %v76_v55, 0.0  ;;  %v55_v63 = vmul.f32 %v330_v4, %v32_v52  ;;  %v56_v0 = vmul.f32 %v330_v4, %v33_v53 }
   0xf   :  { %282 = vmatmul.mubr.msk.bf16.vlgmr.msra.gmra.mxu1 %vm105_vm1, %v101_v54  ;;  %v71_v62 = vadd.f32 %v335_v5, %v48_v56  ;;  %v98_v1 = vpack.c.bf16 %v85_v58, %v84_v57  ;;  %v93_v2 = vmax.f32 %v77_v59, 0.0 }
  0x10   :  { %v86_v3 = vmax.f32 %v70_v60, 0.0  ;;  %v78_v7 = vadd.f32 %v335_v5, %v55_v63  ;;  %v79_v8 = vadd.f32 %v335_v5, %v56_v0 }
  0x11   :  { %v87_v6 = vmax.f32 %v71_v62, 0.0  ;;  %277 = vmatprep.mubr.msk.bf16.mxu0 %vm105_vm1, %v98_v1  ;;  %v102_v9 = vpack.c.bf16 %v93_v2, %v92_v61 }
  0x12   :  { %v94_v11 = vmax.f32 %v78_v7, 0.0  ;;  %v95_v12 = vmax.f32 %v79_v8, 0.0 }
  0x13   :  { %v99_v10 = vpack.c.bf16 %v87_v6, %v86_v3  ;;  %285 = vmatprep.mubr.msk.bf16.mxu1 %vm105_vm1, %v102_v9 }
  0x14   :  { %v103_v13 = vpack.c.bf16 %v95_v12, %v94_v11 }
  0x15   :  { %278 = vmatmul.mubr.msk.bf16.gmra.mxu0 %vm105_vm1, %v99_v10 }
  0x17   :  { %286 = vmatmul.mubr.msk.bf16.gmra.mxu1 %vm105_vm1, %v103_v13 }
  0xcd   :  { %v275_v4 = vpop.f32.mrf.mxu0 }
  0xce   :  { %234 = vst.msk [vmem:[%s487_s4 + $0x10] sm:$0xff] %vm231_vm2, %v275_v4 }
  0xcf   :  { %v283_v5 = vpop.f32.mrf.mxu1  ;;  %v168_v14 = vpop.f32.mrf.mxu0 }
  0xd0   :  { %242 = vst.msk [vmem:[%s487_s4 + $0x50] sm:$0xff] %vm231_vm2, %v283_v5  ;;  %232 = vst.msk [vmem:[%s487_s4] sm:$0xff] %vm231_vm2, %v168_v14 }
  0xd1   :  { %v200_v15 = vpop.f32.mrf.mxu1  ;;  %v276_v16 = vpop.f32.mrf.mxu0 }
  0xd2   :  { %240 = vst.msk [vmem:[%s487_s4 + $0x40] sm:$0xff] %vm231_vm2, %v200_v15  ;;  %235 = vst.msk [vmem:[%s487_s4 + $0x18] sm:$0xff] %vm231_vm2, %v276_v16 }
  0xd3   :  { %v284_v17 = vpop.f32.mrf.mxu1  ;;  %v171_v18 = vpop.f32.mrf.mxu0 }
  0xd4   :  { %243 = vst.msk [vmem:[%s487_s4 + $0x58] sm:$0xff] %vm231_vm2, %v284_v17  ;;  %233 = vst.msk [vmem:[%s487_s4 + $0x8] sm:$0xff] %vm231_vm2, %v171_v18 }
  0xd5   :  { %v203_v19 = vpop.f32.mrf.mxu1  ;;  %v279_v20 = vpop.f32.mrf.mxu0 }
  0xd6   :  { %241 = vst.msk [vmem:[%s487_s4 + $0x48] sm:$0xff] %vm231_vm2, %v203_v19  ;;  %238 = vst.msk [vmem:[%s487_s4 + $0x30] sm:$0xff] %vm231_vm2, %v279_v20 }
  0xd7   :  { %v287_v21 = vpop.f32.mrf.mxu1  ;;  %v184_v22 = vpop.f32.mrf.mxu0 }
  0xd8   :  { %246 = vst.msk [vmem:[%s487_s4 + $0x70] sm:$0xff] %vm231_vm2, %v287_v21  ;;  %236 = vst.msk [vmem:[%s487_s4 + $0x20] sm:$0xff] %vm231_vm2, %v184_v22 }
  0xd9   :  { %v216_v23 = vpop.f32.mrf.mxu1  ;;  %v280_v24 = vpop.f32.mrf.mxu0 }
  0xda   :  { %244 = vst.msk [vmem:[%s487_s4 + $0x60] sm:$0xff] %vm231_vm2, %v216_v23  ;;  %239 = vst.msk [vmem:[%s487_s4 + $0x38] sm:$0xff] %vm231_vm2, %v280_v24 }
  0xdb   :  { %v288_v25 = vpop.f32.mrf.mxu1  ;;  %v187_v26 = vpop.f32.mrf.mxu0 }
  0xdc   :  { %247 = vst.msk [vmem:[%s487_s4 + $0x78] sm:$0xff] %vm231_vm2, %v288_v25  ;;  %237 = vst.msk [vmem:[%s487_s4 + $0x28] sm:$0xff] %vm231_vm2, %v187_v26 }
  0xdd   :  { %v219_v27 = vpop.f32.mrf.mxu1 }
  0xde   :  { %245 = vst.msk [vmem:[%s487_s4 + $0x68] sm:$0xff] %vm231_vm2, %v219_v27 }

// kernel: _forward_impl.17
= control target key start
LH: loop header
LB: loop body
LE: loop exit
PB: predicated region body
PF: predicated region fallthrough
CT: control target
= control target key end

     0   :  { %vm14_vm0 = vcmask 57344   ;;  %vm34_vm1 = vcmask 64512   ;;  %v140_v0 = vmov 0.0   ;;  %s258_s0 = inlined_call_operand.vmem [shape: f32[128,8], index: 0, kind: input, shape index: {}]   ;;  %s259_s1 = inlined_call_operand.vmem [shape: f32[1,8], index: 1, kind: output, shape index: {0}]   ;;  %s260_s2 = inlined_call_operand.vmem [shape: f32[1,8], index: 2, kind: output, shape index: {1}]  }
   0x1   :  { %15 = vst.msk [vmem:[%s259_s1] sm:$0x1] %vm14_vm0, %v140_v0  ;;  %v17_v1 = vld [vmem:[%s258_s0] sm:$0xff]  ;;  %v18_v2 = vld [vmem:[%s258_s0 + $0x8] sm:$0xff]  ;;  %v19_v3 = vld [vmem:[%s258_s0 + $0x10] sm:$0xff] }
   0x2   :  { %16 = vst.msk [vmem:[%s260_s2] sm:$0x1] %vm14_vm0, %v140_v0  ;;  %v35_v4 = vsel %vm34_vm1, %v17_v1, 0.0  ;;  %v36_v5 = vsel %vm34_vm1, %v18_v2, 0.0  ;;  %v38_v6 = vsel %vm34_vm1, %v19_v3, 0.0  ;;  %v20_v7 = vld [vmem:[%s258_s0 + $0x18] sm:$0xff]  ;;  %v76_v15 = vmul.f32 %v17_v1, %v17_v1 }
   0x3   :  { %v37_v8 = vadd.f32 %v36_v5, %v35_v4  ;;  %v40_v9 = vsel %vm34_vm1, %v20_v7, 0.0  ;;  %v21_v10 = vld [vmem:[%s258_s0 + $0x20] sm:$0xff]  ;;  %v22_v13 = vld [vmem:[%s258_s0 + $0x28] sm:$0xff]  ;;  %v77_v16 = vmul.f32 %v18_v2, %v18_v2  ;;  %v78_v17 = vmul.f32 %v19_v3, %v19_v3  ;;  %v23_v19 = vld [vmem:[%s258_s0 + $0x30] sm:$0xff] }
   0x4   :  { %v42_v12 = vsel %vm34_vm1, %v21_v10, 0.0  ;;  %v44_v18 = vsel %vm34_vm1, %v22_v13, 0.0  ;;  %v79_v21 = vmul.f32 %v20_v7, %v20_v7  ;;  %v46_v22 = vsel %vm34_vm1, %v23_v19, 0.0  ;;  %v24_v24 = vld [vmem:[%s258_s0 + $0x38] sm:$0xff]  ;;  %v25_v31 = vld [vmem:[%s258_s0 + $0x40] sm:$0xff]  ;;  %v26_v37 = vld [vmem:[%s258_s0 + $0x48] sm:$0xff] }
   0x5   :  { %v39_v11 = vadd.f32 %v38_v6, %v37_v8  ;;  %v80_v23 = vmul.f32 %v21_v10, %v21_v10  ;;  %v92_v26 = vsel %vm34_vm1, %v76_v15, 0.0  ;;  %v93_v27 = vsel %vm34_vm1, %v77_v16, 0.0  ;;  %v27_v43 = vld [vmem:[%s258_s0 + $0x50] sm:$0xff]  ;;  %v28_v49 = vld [vmem:[%s258_s0 + $0x58] sm:$0xff]  ;;  %v29_v55 = vld [vmem:[%s258_s0 + $0x60] sm:$0xff] }
   0x6   :  { %v95_v28 = vsel %vm34_vm1, %v78_v17, 0.0  ;;  %v48_v29 = vsel %vm34_vm1, %v24_v24, 0.0  ;;  %v94_v30 = vadd.f32 %v93_v27, %v92_v26  ;;  %v81_v33 = vmul.f32 %v22_v13, %v22_v13  ;;  %v30_v61 = vld [vmem:[%s258_s0 + $0x68] sm:$0xff]  ;;  %v31_v3 = vld [vmem:[%s258_s0 + $0x70] sm:$0xff] }
   0x7   :  { %v41_v14 = vadd.f32 %v40_v9, %v39_v11  ;;  %v97_v34 = vsel %vm34_vm1, %v79_v21, 0.0  ;;  %v50_v35 = vsel %vm34_vm1, %v25_v31, 0.0  ;;  %v82_v39 = vmul.f32 %v23_v19, %v23_v19  ;;  %v32_v9 = vld [vmem:[%s258_s0 + $0x78] sm:$0xff] }
   0x8   :  { %v96_v36 = vadd.f32 %v95_v28, %v94_v30  ;;  %v99_v40 = vsel %vm34_vm1, %v80_v23, 0.0  ;;  %v52_v41 = vsel %vm34_vm1, %v26_v37, 0.0  ;;  %v83_v45 = vmul.f32 %v24_v24, %v24_v24 }
   0x9   :  { %v43_v20 = vadd.f32 %v42_v12, %v41_v14  ;;  %v101_v46 = vsel %vm34_vm1, %v81_v33, 0.0  ;;  %v54_v47 = vsel %vm34_vm1, %v27_v43, 0.0  ;;  %v84_v51 = vmul.f32 %v25_v31, %v25_v31 }
   0xa   :  { %v98_v42 = vadd.f32 %v97_v34, %v96_v36  ;;  %v103_v52 = vsel %vm34_vm1, %v82_v39, 0.0  ;;  %v56_v53 = vsel %vm34_vm1, %v28_v49, 0.0  ;;  %v85_v57 = vmul.f32 %v26_v37, %v26_v37  ;;  %v33_v36 = vld [vmem:[%s259_s1] sm:$0x1] }
   0xb   :  { %v45_v25 = vadd.f32 %v44_v18, %v43_v20  ;;  %v105_v58 = vsel %vm34_vm1, %v83_v45, 0.0  ;;  %v58_v59 = vsel %vm34_vm1, %v29_v55, 0.0  ;;  %v86_v63 = vmul.f32 %v27_v43, %v27_v43 }
   0xc   :  { %v100_v48 = vadd.f32 %v99_v40, %v98_v42  ;;  %v107_v0 = vsel %vm34_vm1, %v84_v51, 0.0  ;;  %v60_v1 = vsel %vm34_vm1, %v30_v61, 0.0  ;;  %v87_v5 = vmul.f32 %v28_v49, %v28_v49 }
   0xd   :  { %v47_v32 = vadd.f32 %v46_v22, %v45_v25  ;;  %v109_v6 = vsel %vm34_vm1, %v85_v57, 0.0  ;;  %v62_v7 = vsel %vm34_vm1, %v31_v3, 0.0  ;;  %v88_v11 = vmul.f32 %v29_v55, %v29_v55 }
   0xe   :  { %v102_v54 = vadd.f32 %v101_v46, %v100_v48  ;;  %v111_v12 = vsel %vm34_vm1, %v86_v63, 0.0  ;;  %v64_v13 = vsel %vm34_vm1, %v32_v9, 0.0  ;;  %v89_v16 = vmul.f32 %v30_v61, %v30_v61 }
   0xf   :  { %v49_v38 = vadd.f32 %v48_v29, %v47_v32  ;;  %v113_v17 = vsel %vm34_vm1, %v87_v5, 0.0  ;;  %v90_v20 = vmul.f32 %v31_v3, %v31_v3  ;;  %v115_v21 = vsel %vm34_vm1, %v88_v11, 0.0 }
  0x10   :  { %v104_v60 = vadd.f32 %v103_v52, %v102_v54  ;;  %v91_v24 = vmul.f32 %v32_v9, %v32_v9  ;;  %v117_v25 = vsel %vm34_vm1, %v89_v16, 0.0 }
  0x11   :  { %v51_v44 = vadd.f32 %v50_v35, %v49_v38  ;;  %v119_v28 = vsel %vm34_vm1, %v90_v20, 0.0 }
  0x12   :  { %v106_v2 = vadd.f32 %v105_v58, %v104_v60  ;;  %v121_v31 = vsel %vm34_vm1, %v91_v24, 0.0 }
  0x13   :  { %v53_v50 = vadd.f32 %v52_v41, %v51_v44  ;;  %v75_v44 = vld [vmem:[%s260_s2] sm:$0x1] }
  0x14   :  { %v108_v8 = vadd.f32 %v107_v0, %v106_v2 }
  0x15   :  { %v55_v56 = vadd.f32 %v54_v47, %v53_v50 }
  0x16   :  { %v110_v14 = vadd.f32 %v109_v6, %v108_v8 }
  0x17   :  { %v57_v62 = vadd.f32 %v56_v53, %v55_v56 }
  0x18   :  { %v112_v18 = vadd.f32 %v111_v12, %v110_v14 }
  0x19   :  { %v59_v4 = vadd.f32 %v58_v59, %v57_v62 }
  0x1a   :  { %v114_v22 = vadd.f32 %v113_v17, %v112_v18 }
  0x1b   :  { %v61_v10 = vadd.f32 %v60_v1, %v59_v4 }
  0x1c   :  { %v116_v26 = vadd.f32 %v115_v21, %v114_v22 }
  0x1d   :  { %v63_v15 = vadd.f32 %v62_v7, %v61_v10 }
  0x1e   :  { %v118_v29 = vadd.f32 %v117_v25, %v116_v26 }
  0x1f   :  { %v65_v19 = vadd.f32 %v64_v13, %v63_v15 }
  0x20   :  { %v120_v32 = vadd.f32 %v119_v28, %v118_v29 }
  0x21   :  { %v66_v23 = vrot.slane %v65_v19, 4 }
  0x22   :  { %v122_v34 = vadd.f32 %v121_v31, %v120_v32 }
  0x23   :  { %v67_v27 = vadd.f32 %v66_v23, %v65_v19 }
  0x24   :  { %v123_v37 = vrot.slane %v122_v34, 4 }
  0x25   :  { %v68_v30 = vrot.slane %v67_v27, 2 }
  0x26   :  { %v124_v39 = vadd.f32 %v123_v37, %v122_v34 }
  0x27   :  { %v69_v33 = vadd.f32 %v68_v30, %v67_v27 }
  0x28   :  { %v125_v41 = vrot.slane %v124_v39, 2 }
  0x29   :  { %v70_v35 = vrot.slane %v69_v33, 1 }
  0x2a   :  { %v126_v42 = vadd.f32 %v125_v41, %v124_v39 }
  0x2b   :  { %v71_v38 = vadd.f32 %v70_v35, %v69_v33 }
  0x2c   :  { %v127_v43 = vrot.slane %v126_v42, 1 }
  0x2d   :  { %v72_v40 = vadd.f32 %v71_v38, %v33_v36 }
  0x2e   :  { %v128_v45 = vadd.f32 %v127_v43, %v126_v42 }
  0x2f   :  { %74 = vst.msk [vmem:[%s259_s1] sm:$0x1] %vm14_vm0, %v72_v40 }
  0x30   :  { %v129_v46 = vadd.f32 %v128_v45, %v75_v44 }
  0x32   :  { %130 = vst.msk [vmem:[%s260_s2] sm:$0x1] %vm14_vm0, %v129_v46 }

// kernel: _forward_impl.19
= control target key start
LH: loop header
LB: loop body
LE: loop exit
PB: predicated region body
PF: predicated region fallthrough
CT: control target
= control target key end

     0   :  { %s56_s0 = inlined_call_operand.vmem [shape: f32[16,128], index: 0, kind: input, shape index: {}]   ;;  %s57_s1 = inlined_call_operand.vmem [shape: f32[16,128], index: 1, kind: output, shape index: {}]  }
   0x1   :  { %v8_v0 = vld [vmem:[%s56_s0] sm:$0xff]  ;;  %v9_v1 = vld [vmem:[%s56_s0 + $0x8] sm:$0xff] }
   0x2   :  { %v10_v2 = vsub.f32 0.0, %v8_v0  ;;  %v11_v3 = vsub.f32 0.0, %v9_v1 }
   0x4   :  { %v12_v4 = vmul.f32 1.442695, %v10_v2  ;;  %v14_v5 = vmul.f32 1.442695, %v11_v3 }
   0x6   :  { %26 = vpow2.f32 %v12_v4 }
   0x7   :  { %28 = vpow2.f32 %v14_v5 }
  0x13   :  { %v27_v6 = vpop.eup %26 }
  0x14   :  { %v29_v7 = vpop.eup %28  ;;  %v16_v8 = vadd.f32 1.0, %v27_v6 }
  0x15   :  { %v17_v9 = vadd.f32 1.0, %v29_v7 }
  0x16   :  { %30 = vrcp.f32 %v16_v8 }
  0x17   :  { %32 = vrcp.f32 %v17_v9 }
  0x23   :  { %v31_v10 = vpop.eup %30 }
  0x24   :  { %v33_v11 = vpop.eup %32  ;;  %20 = vst [vmem:[%s57_s1] sm:$0xff] %v31_v10 }
  0x25   :  { %21 = vst [vmem:[%s57_s1 + $0x8] sm:$0xff] %v33_v11 }

</bundles_post_ra>
